<compile_context>
chip_gen: v5e
topology: v5e:2x2
jax: 0.10.0
libtpu: 0.0.40
codegen_flags: <defaults>
</compile_context>

<pallas_src>
import math

import numpy as np
import jax
import jax.numpy as jnp
from jax import lax
from jax.experimental import pallas as pl
from jax.experimental.pallas import tpu as pltpu

# ------------------------- module hyper-parameters ---------------------------
INPUT_DIM = 32
NUM_LABEL = 4
COMP = 2
LC = NUM_LABEL * COMP                        # subtype_num = 8
K = NUM_LABEL * NUM_LABEL * COMP * COMP      # flattened (lL,lR,cL,cR) = 64
NUM_LEAVES = 8
NUM_NODES = 2 * NUM_LEAVES - 1               # 15
NUM_INTERNAL = NUM_LEAVES - 1                # 7
NODES_PAD = 16                               # sublane-aligned node count
LANES = 128                                  # lane width / padded K
NEG = -1.0e30                                # logsumexp-safe pad (NOT zero, NOT -inf)


# ------------------------------ fused kernel ---------------------------------
def _tree_inside_kernel(sched_ref, hid_ref, wt_ref, b_ref, t2_ref,
                        sell_ref, selr_ref, out_ref):
    # Emissions (state_weight_layer) for every node, written as a lane-dense slab.
    # wt / b are zero-padded in lanes LC..127, so those lanes stay exactly 0.
    out_ref[...] = (
        jnp.dot(hid_ref[...], wt_ref[...], preferred_element_type=jnp.float32)
        + b_ref[...]
    )

    # Resident operands (loaded once, reused for all 7 combines).
    t2 = t2_ref[...]        # (LC, 128): rows (lP,cP), lanes 0..63 real, 64..127 = NEG
    sel_l = sell_ref[...]   # (128, 128) 0/1: lane j of child row -> lane k of K space
    sel_r = selr_ref[...]

    # Scatter matrix: puts an (LC,1) column into lanes 0..LC-1 of a (1,128) row
    # via multiply + sublane reduction (avoids an (8,1)->(1,8) reshape/transpose).
    row_i = lax.broadcasted_iota(jnp.int32, (LC, LANES), 0)
    col_i = lax.broadcasted_iota(jnp.int32, (LC, LANES), 1)
    scatter = (row_i == col_i).astype(jnp.float32)

    def body(i, carry):
        nid = sched_ref[3 * i]          # parent node id
        lid = sched_ref[3 * i + 1]      # left child id
        rid = sched_ref[3 * i + 2]      # right child id

        p_row = out_ref[pl.ds(nid, 1), :]   # (1,128) parent state_weight (emission)
        l_row = out_ref[pl.ds(lid, 1), :]   # (1,128) left in_weight
        r_row = out_ref[pl.ds(rid, 1), :]   # (1,128) right in_weight

        # Broadcast children scores onto the flattened K axis (MXU matvec).
        lb = jnp.dot(l_row, sel_l, preferred_element_type=jnp.float32)  # (1,128)
        rb = jnp.dot(r_row, sel_r, preferred_element_type=jnp.float32)  # (1,128)

        # p factored out:  in = p + logsumexp_k( trans + l_k + r_k )
        s = t2 + lb + rb                                   # (LC, 128)
        m = jnp.max(s, axis=1, keepdims=True)              # (LC, 1)
        lse = m + jnp.log(jnp.sum(jnp.exp(s - m), axis=1, keepdims=True))  # (LC,1)
        lse_row = jnp.sum(lse * scatter, axis=0, keepdims=True)           # (1,128)

        # Lanes >= LC stay 0 (p_row is 0 there, lse_row is 0 there).
        out_ref[pl.ds(nid, 1), :] = p_row + lse_row
        return carry

    lax.fori_loop(0, NUM_INTERNAL, body, 0, unroll=True)


# ------------------------------ host wrapper ----------------------------------
def _build_selectors():
    """0/1 selection matrices mapping a child's (1,LC) row onto the K axis."""
    k = np.arange(K)
    c_r = k % COMP
    c_l = (k // COMP) % COMP
    l_r = (k // (COMP * COMP)) % NUM_LABEL
    l_l = k // (COMP * COMP * NUM_LABEL)
    lmap = l_l * COMP + c_l                      # left child flat index per k
    rmap = l_r * COMP + c_r                      # right child flat index per k
    sel_l = np.zeros((LANES, LANES), np.float32)
    sel_r = np.zeros((LANES, LANES), np.float32)
    sel_l[lmap, k] = 1.0
    sel_r[rmap, k] = 1.0
    return jnp.asarray(sel_l), jnp.asarray(sel_r)


@jax.jit
def binary_tree_inside(sched, hiddens, w, b, trans, sel_l, sel_r):
    """One XLA program / one kernel launch for the full inside pass.

    sched:   (3*NUM_INTERNAL,) int32 post-order (parent, left, right) triples
    hiddens: (NUM_NODES, INPUT_DIM) f32 bottom-up node hidden states
    w:       (LC, INPUT_DIM) f32 state_weight_layer weight
    b:       (LC,) f32 state_weight_layer bias
    trans:   (L, L, L, C, C, C) f32 trans_matrix
    Returns (NUM_NODES, NUM_LABEL, COMP) in_weight for every node.
    """
    n, _ = hiddens.shape
    hid = jnp.pad(hiddens, ((0, NODES_PAD - n), (0, 0)))
    wt = jnp.pad(w.T.astype(jnp.float32), ((0, 0), (0, LANES - LC)))
    b_row = jnp.pad(b.reshape(1, LC).astype(jnp.float32), ((0, 0), (0, LANES - LC)))
    # rows = (lP,cP), lanes = (lL,lR,cL,cR); pad lanes with -1e30 for the logsumexp
    t2 = jnp.transpose(trans, (0, 3, 1, 2, 4, 5)).reshape(LC, K)
    t2 = jnp.pad(t2, ((0, 0), (0, LANES - K)), constant_values=NEG)

    grid_spec = pltpu.PrefetchScalarGridSpec(
        num_scalar_prefetch=1,                     # schedule table -> SMEM
        grid=(1,),
        in_specs=[
            pl.BlockSpec((NODES_PAD, INPUT_DIM), lambda i, s: (0, 0)),
            pl.BlockSpec((INPUT_DIM, LANES), lambda i, s: (0, 0)),
            pl.BlockSpec((1, LANES), lambda i, s: (0, 0)),
            pl.BlockSpec((LC, LANES), lambda i, s: (0, 0)),
            pl.BlockSpec((LANES, LANES), lambda i, s: (0, 0)),
            pl.BlockSpec((LANES, LANES), lambda i, s: (0, 0)),
        ],
        out_specs=pl.BlockSpec((NODES_PAD, LANES), lambda i, s: (0, 0)),
    )

    slab = pl.pallas_call(
        _tree_inside_kernel,
        out_shape=jax.ShapeDtypeStruct((NODES_PAD, LANES), jnp.float32),
        grid_spec=grid_spec,
        compiler_params=pltpu.CompilerParams(dimension_semantics=("arbitrary",)),
    )(sched, hid, wt, b_row, t2, sel_l, sel_r)

    return slab[:n, :LC].reshape(n, NUM_LABEL, COMP)


# ------------------------ tree construction (host glue) -----------------------
def build_balanced(leaf_start, num_leaves, next_id):
    """Balanced binary tree. Leaves ('leaf', id); internal ('node', id, l, r)."""
    if num_leaves == 1:
        return ("leaf", leaf_start), next_id
    half = num_leaves // 2
    left, next_id = build_balanced(leaf_start, half, next_id)
    right, next_id = build_balanced(leaf_start + half, num_leaves - half, next_id)
    return ("node", next_id, left, right), next_id + 1


def build_schedule(node, sched):
    """Post-order (parent, left, right) triples -> children always before parents."""
    if node[0] == "leaf":
        return node[1]
    _, nid, lt, rt = node
    lid = build_schedule(lt, sched)
    rid = build_schedule(rt, sched)
    sched.append((nid, lid, rid))
    return nid


# --------------------------- pure-JAX reference --------------------------------
def ref_inside(node, state_w, trans, cache):
    if node[0] == "leaf":
        cache[node[1]] = state_w[node[1]]
        return state_w[node[1]]
    _, nid, lt, rt = node
    lw = ref_inside(lt, state_w, trans, cache)
    rw = ref_inside(rt, state_w, trans, cache)
    p = state_w[nid]
    s = (
        p[:, None, None, :, None, None]
        + lw[None, :, None, None, :, None]
        + rw[None, None, :, None, None, :]
        + trans
    )
    s = jnp.transpose(s, (0, 3, 1, 2, 4, 5)).reshape(NUM_LABEL, COMP, -1)
    iw = jax.scipy.special.logsumexp(s, axis=2)
    cache[nid] = iw
    return iw


# ------------------------------------ main -------------------------------------
if __name__ == "__main__":
    key = jax.random.PRNGKey(0)
    k_h, k_w, k_b, k_t = jax.random.split(key, 4)

    # bottom-up hidden state h per tree node (leaves 0..7, internals 8..14)
    hiddens = jax.random.normal(k_h, (NUM_NODES, INPUT_DIM), dtype=jnp.float32)

    # state_weight_layer = Linear(input_dim, num_label*comp)
    w = jax.random.normal(k_w, (LC, INPUT_DIM), dtype=jnp.float32) * (
        1.0 / math.sqrt(INPUT_DIM)
    )
    bias = jax.random.normal(k_b, (LC,), dtype=jnp.float32) * 0.1

    # trans_matrix: (L, L, L, C, C, C), xavier_normal_-style init
    fan = NUM_LABEL * (NUM_LABEL * COMP * COMP * COMP)
    std = math.sqrt(2.0 / (fan + fan))
    trans = (
        jax.random.normal(
            k_t, (NUM_LABEL, NUM_LABEL, NUM_LABEL, COMP, COMP, COMP), jnp.float32
        )
        * std
    )

    # static tree structure -> schedule table for the in-kernel loop
    tree, root_id = build_balanced(0, NUM_LEAVES, NUM_LEAVES)
    sched_list = []
    build_schedule(tree, sched_list)
    assert len(sched_list) == NUM_INTERNAL
    sched = jnp.asarray(np.asarray(sched_list, np.int32).reshape(-1))   # (21,)

    sel_l, sel_r = _build_selectors()

    # single fused kernel: emissions + full tree inside pass
    in_weights = binary_tree_inside(sched, hiddens, w, bias, trans, sel_l, sel_r)
    in_weights = jax.block_until_ready(in_weights)
    root_inside = in_weights[NUM_NODES - 1]

    # pure-JAX reference (all nodes)
    state_w_ref = (hiddens @ w.T + bias).reshape(NUM_NODES, NUM_LABEL, COMP)
    cache = {}
    ref_root = ref_inside(tree, state_w_ref, trans, cache)
    ref_all = jnp.stack([cache[i] for i in range(NUM_NODES)])

    assert root_inside.shape == (NUM_LABEL, COMP)
    assert jnp.allclose(in_weights, ref_all, atol=5e-4, rtol=5e-4), (
        in_weights,
        ref_all,
    )
    assert jnp.allclose(root_inside, ref_root, atol=5e-4, rtol=5e-4)
    print("KERNEL_OK")
</pallas_src>

<mosaic_0001>
module attributes {stable_mosaic.version = 11 : i64} {
  func.func @_tree_inside_kernel(%arg0: i32, %arg1: memref<21xi32, #tpu.memory_space<smem>>, %arg2: memref<16x32xf32, #tpu.memory_space<vmem>>, %arg3: memref<32x128xf32, #tpu.memory_space<vmem>>, %arg4: memref<1x128xf32, #tpu.memory_space<vmem>>, %arg5: memref<8x128xf32, #tpu.memory_space<vmem>>, %arg6: memref<128x128xf32, #tpu.memory_space<vmem>>, %arg7: memref<128x128xf32, #tpu.memory_space<vmem>>, %arg8: memref<16x128xf32, #tpu.memory_space<vmem>>) attributes {dimension_semantics = [#tpu.dimension_semantics<arbitrary>], iteration_bounds = array<i64: 1>, scalar_prefetch = 1 : i64, scratch_operands = 0 : i64, tpu.core_type = #tpu.core_type<tc>, window_params = [{pipeline_mode = #tpu.pipeline_mode<synchronous>, transform_indices = @transform_0, window_bounds = array<i64: 16, 32>}, {pipeline_mode = #tpu.pipeline_mode<synchronous>, transform_indices = @transform_1, window_bounds = array<i64: 32, 128>}, {pipeline_mode = #tpu.pipeline_mode<synchronous>, transform_indices = @transform_2, window_bounds = array<i64: 1, 128>}, {pipeline_mode = #tpu.pipeline_mode<synchronous>, transform_indices = @transform_3, window_bounds = array<i64: 8, 128>}, {pipeline_mode = #tpu.pipeline_mode<synchronous>, transform_indices = @transform_4, window_bounds = array<i64: 128, 128>}, {pipeline_mode = #tpu.pipeline_mode<synchronous>, transform_indices = @transform_5, window_bounds = array<i64: 128, 128>}, {pipeline_mode = #tpu.pipeline_mode<synchronous>, transform_indices = @transform_6, window_bounds = array<i64: 16, 128>}]} {
    %c0 = arith.constant 0 : index
    %c0_0 = arith.constant 0 : index
    %0 = vector.load %arg2[%c0, %c0_0] : memref<16x32xf32, #tpu.memory_space<vmem>>, vector<16x32xf32>
    %c0_1 = arith.constant 0 : index
    %c0_2 = arith.constant 0 : index
    %1 = vector.load %arg3[%c0_1, %c0_2] : memref<32x128xf32, #tpu.memory_space<vmem>>, vector<32x128xf32>
    %cst = arith.constant dense<0.000000e+00> : vector<16x128xf32>
    %2 = tpu.matmul %0, %1, %cst {dimension_numbers = #tpu.dot_dimension_numbers<[1], [0], [0], [1], [0, 0, 1, 1], [], []>} : vector<16x32xf32>, vector<32x128xf32>, vector<16x128xf32> -> vector<16x128xf32>
    %c0_3 = arith.constant 0 : index
    %c0_4 = arith.constant 0 : index
    %3 = vector.load %arg4[%c0_3, %c0_4] : memref<1x128xf32, #tpu.memory_space<vmem>>, vector<1x128xf32>
    %4 = vector.broadcast %3 : vector<1x128xf32> to vector<16x128xf32>
    %5 = arith.addf %2, %4 : vector<16x128xf32>
    %c0_5 = arith.constant 0 : index
    %c0_6 = arith.constant 0 : index
    %6 = vector.load %arg8[%c0_5, %c0_6] : memref<16x128xf32, #tpu.memory_space<vmem>>, vector<16x128xf32>
    tpu.vector_store %arg8[%c0_5, %c0_6], %5 {strides = array<i32>} : memref<16x128xf32, #tpu.memory_space<vmem>>, vector<16x128xf32>,
    %c0_7 = arith.constant 0 : index
    %c0_8 = arith.constant 0 : index
    %7 = vector.load %arg5[%c0_7, %c0_8] : memref<8x128xf32, #tpu.memory_space<vmem>>, vector<8x128xf32>
    %c0_9 = arith.constant 0 : index
    %c0_10 = arith.constant 0 : index
    %8 = vector.load %arg6[%c0_9, %c0_10] : memref<128x128xf32, #tpu.memory_space<vmem>>, vector<128x128xf32>
    %c0_11 = arith.constant 0 : index
    %c0_12 = arith.constant 0 : index
    %9 = vector.load %arg7[%c0_11, %c0_12] : memref<128x128xf32, #tpu.memory_space<vmem>>, vector<128x128xf32>
    %10 = tpu.iota {dimensions = array<i32: 0>} : vector<8x128xi32>
    %11 = tpu.iota {dimensions = array<i32: 1>} : vector<8x128xi32>
    %12 = arith.cmpi eq, %10, %11 : vector<8x128xi32>
    %13 = arith.extui %12 : vector<8x128xi1> to vector<8x128xi32>
    %14 = arith.sitofp %13 : vector<8x128xi32> to vector<8x128xf32>
    %c0_i32 = arith.constant 0 : i32
    %c3_i32 = arith.constant 3 : i32
    %15 = arith.muli %c3_i32, %c0_i32 : i32
    %16 = arith.index_cast %15 : i32 to index
    %17 = memref.load %arg1[%16] : memref<21xi32, #tpu.memory_space<smem>>
    %c3_i32_13 = arith.constant 3 : i32
    %18 = arith.muli %c3_i32_13, %c0_i32 : i32
    %c1_i32 = arith.constant 1 : i32
    %19 = arith.addi %18, %c1_i32 : i32
    %20 = arith.index_cast %19 : i32 to index
    %21 = memref.load %arg1[%20] : memref<21xi32, #tpu.memory_space<smem>>
    %c3_i32_14 = arith.constant 3 : i32
    %22 = arith.muli %c3_i32_14, %c0_i32 : i32
    %c2_i32 = arith.constant 2 : i32
    %23 = arith.addi %22, %c2_i32 : i32
    %24 = arith.index_cast %23 : i32 to index
    %25 = memref.load %arg1[%24] : memref<21xi32, #tpu.memory_space<smem>>
    %26 = arith.index_cast %17 : i32 to index
    %c0_15 = arith.constant 0 : index
    %27 = vector.load %arg8[%26, %c0_15] : memref<16x128xf32, #tpu.memory_space<vmem>>, vector<1x128xf32>
    %28 = arith.index_cast %21 : i32 to index
    %c0_16 = arith.constant 0 : index
    %29 = vector.load %arg8[%28, %c0_16] : memref<16x128xf32, #tpu.memory_space<vmem>>, vector<1x128xf32>
    %30 = arith.index_cast %25 : i32 to index
    %c0_17 = arith.constant 0 : index
    %31 = vector.load %arg8[%30, %c0_17] : memref<16x128xf32, #tpu.memory_space<vmem>>, vector<1x128xf32>
    %cst_18 = arith.constant dense<0.000000e+00> : vector<1x128xf32>
    %32 = tpu.matmul %29, %8, %cst_18 {dimension_numbers = #tpu.dot_dimension_numbers<[1], [0], [0], [1], [0, 0, 1, 1], [], []>} : vector<1x128xf32>, vector<128x128xf32>, vector<1x128xf32> -> vector<1x128xf32>
    %cst_19 = arith.constant dense<0.000000e+00> : vector<1x128xf32>
    %33 = tpu.matmul %31, %9, %cst_19 {dimension_numbers = #tpu.dot_dimension_numbers<[1], [0], [0], [1], [0, 0, 1, 1], [], []>} : vector<1x128xf32>, vector<128x128xf32>, vector<1x128xf32> -> vector<1x128xf32>
    %34 = vector.broadcast %32 : vector<1x128xf32> to vector<8x128xf32>
    %35 = arith.addf %7, %34 : vector<8x128xf32>
    %36 = vector.broadcast %33 : vector<1x128xf32> to vector<8x128xf32>
    %37 = arith.addf %35, %36 : vector<8x128xf32>
    %cst_20 = arith.constant dense<0xFF800000> : vector<8xf32>
    %38 = vector.multi_reduction <maximumf>, %37, %cst_20 [1] : vector<8x128xf32> to vector<8xf32>
    %39 = vector.shape_cast %38 : vector<8xf32> to vector<8x1xf32>
    %40 = vector.broadcast %39 : vector<8x1xf32> to vector<8x128xf32>
    %41 = arith.subf %37, %40 : vector<8x128xf32>
    %42 = math.exp %41 : vector<8x128xf32>
    %cst_21 = arith.constant dense<0.000000e+00> : vector<8xf32>
    %43 = vector.multi_reduction <add>, %42, %cst_21 [1] : vector<8x128xf32> to vector<8xf32>
    %44 = vector.shape_cast %43 : vector<8xf32> to vector<8x1xf32>
    %45 = math.log %44 : vector<8x1xf32>
    %46 = arith.addf %39, %45 : vector<8x1xf32>
    %47 = vector.broadcast %46 : vector<8x1xf32> to vector<8x128xf32>
    %48 = arith.mulf %47, %14 : vector<8x128xf32>
    %cst_22 = arith.constant dense<0.000000e+00> : vector<128xf32>
    %49 = vector.multi_reduction <add>, %48, %cst_22 [0] : vector<8x128xf32> to vector<128xf32>
    %50 = vector.shape_cast %49 : vector<128xf32> to vector<1x128xf32>
    %51 = arith.addf %27, %50 : vector<1x128xf32>
    %52 = arith.index_cast %17 : i32 to index
    %c0_23 = arith.constant 0 : index
    %53 = vector.load %arg8[%52, %c0_23] : memref<16x128xf32, #tpu.memory_space<vmem>>, vector<1x128xf32>
    tpu.vector_store %arg8[%52, %c0_23], %51 {strides = array<i32>} : memref<16x128xf32, #tpu.memory_space<vmem>>, vector<1x128xf32>,
    %c1_i32_24 = arith.constant 1 : i32
    %c3_i32_25 = arith.constant 3 : i32
    %54 = arith.muli %c3_i32_25, %c1_i32_24 : i32
    %55 = arith.index_cast %54 : i32 to index
    %56 = memref.load %arg1[%55] : memref<21xi32, #tpu.memory_space<smem>>
    %c3_i32_26 = arith.constant 3 : i32
    %57 = arith.muli %c3_i32_26, %c1_i32_24 : i32
    %c1_i32_27 = arith.constant 1 : i32
    %58 = arith.addi %57, %c1_i32_27 : i32
    %59 = arith.index_cast %58 : i32 to index
    %60 = memref.load %arg1[%59] : memref<21xi32, #tpu.memory_space<smem>>
    %c3_i32_28 = arith.constant 3 : i32
    %61 = arith.muli %c3_i32_28, %c1_i32_24 : i32
    %c2_i32_29 = arith.constant 2 : i32
    %62 = arith.addi %61, %c2_i32_29 : i32
    %63 = arith.index_cast %62 : i32 to index
    %64 = memref.load %arg1[%63] : memref<21xi32, #tpu.memory_space<smem>>
    %65 = arith.index_cast %56 : i32 to index
    %c0_30 = arith.constant 0 : index
    %66 = vector.load %arg8[%65, %c0_30] : memref<16x128xf32, #tpu.memory_space<vmem>>, vector<1x128xf32>
    %67 = arith.index_cast %60 : i32 to index
    %c0_31 = arith.constant 0 : index
    %68 = vector.load %arg8[%67, %c0_31] : memref<16x128xf32, #tpu.memory_space<vmem>>, vector<1x128xf32>
    %69 = arith.index_cast %64 : i32 to index
    %c0_32 = arith.constant 0 : index
    %70 = vector.load %arg8[%69, %c0_32] : memref<16x128xf32, #tpu.memory_space<vmem>>, vector<1x128xf32>
    %cst_33 = arith.constant dense<0.000000e+00> : vector<1x128xf32>
    %71 = tpu.matmul %68, %8, %cst_33 {dimension_numbers = #tpu.dot_dimension_numbers<[1], [0], [0], [1], [0, 0, 1, 1], [], []>} : vector<1x128xf32>, vector<128x128xf32>, vector<1x128xf32> -> vector<1x128xf32>
    %cst_34 = arith.constant dense<0.000000e+00> : vector<1x128xf32>
    %72 = tpu.matmul %70, %9, %cst_34 {dimension_numbers = #tpu.dot_dimension_numbers<[1], [0], [0], [1], [0, 0, 1, 1], [], []>} : vector<1x128xf32>, vector<128x128xf32>, vector<1x128xf32> -> vector<1x128xf32>
    %73 = vector.broadcast %71 : vector<1x128xf32> to vector<8x128xf32>
    %74 = arith.addf %7, %73 : vector<8x128xf32>
    %75 = vector.broadcast %72 : vector<1x128xf32> to vector<8x128xf32>
    %76 = arith.addf %74, %75 : vector<8x128xf32>
    %cst_35 = arith.constant dense<0xFF800000> : vector<8xf32>
    %77 = vector.multi_reduction <maximumf>, %76, %cst_35 [1] : vector<8x128xf32> to vector<8xf32>
    %78 = vector.shape_cast %77 : vector<8xf32> to vector<8x1xf32>
    %79 = vector.broadcast %78 : vector<8x1xf32> to vector<8x128xf32>
    %80 = arith.subf %76, %79 : vector<8x128xf32>
    %81 = math.exp %80 : vector<8x128xf32>
    %cst_36 = arith.constant dense<0.000000e+00> : vector<8xf32>
    %82 = vector.multi_reduction <add>, %81, %cst_36 [1] : vector<8x128xf32> to vector<8xf32>
    %83 = vector.shape_cast %82 : vector<8xf32> to vector<8x1xf32>
    %84 = math.log %83 : vector<8x1xf32>
    %85 = arith.addf %78, %84 : vector<8x1xf32>
    %86 = vector.broadcast %85 : vector<8x1xf32> to vector<8x128xf32>
    %87 = arith.mulf %86, %14 : vector<8x128xf32>
    %cst_37 = arith.constant dense<0.000000e+00> : vector<128xf32>
    %88 = vector.multi_reduction <add>, %87, %cst_37 [0] : vector<8x128xf32> to vector<128xf32>
    %89 = vector.shape_cast %88 : vector<128xf32> to vector<1x128xf32>
    %90 = arith.addf %66, %89 : vector<1x128xf32>
    %91 = arith.index_cast %56 : i32 to index
    %c0_38 = arith.constant 0 : index
    %92 = vector.load %arg8[%91, %c0_38] : memref<16x128xf32, #tpu.memory_space<vmem>>, vector<1x128xf32>
    tpu.vector_store %arg8[%91, %c0_38], %90 {strides = array<i32>} : memref<16x128xf32, #tpu.memory_space<vmem>>, vector<1x128xf32>,
    %c2_i32_39 = arith.constant 2 : i32
    %c3_i32_40 = arith.constant 3 : i32
    %93 = arith.muli %c3_i32_40, %c2_i32_39 : i32
    %94 = arith.index_cast %93 : i32 to index
    %95 = memref.load %arg1[%94] : memref<21xi32, #tpu.memory_space<smem>>
    %c3_i32_41 = arith.constant 3 : i32
    %96 = arith.muli %c3_i32_41, %c2_i32_39 : i32
    %c1_i32_42 = arith.constant 1 : i32
    %97 = arith.addi %96, %c1_i32_42 : i32
    %98 = arith.index_cast %97 : i32 to index
    %99 = memref.load %arg1[%98] : memref<21xi32, #tpu.memory_space<smem>>
    %c3_i32_43 = arith.constant 3 : i32
    %100 = arith.muli %c3_i32_43, %c2_i32_39 : i32
    %c2_i32_44 = arith.constant 2 : i32
    %101 = arith.addi %100, %c2_i32_44 : i32
    %102 = arith.index_cast %101 : i32 to index
    %103 = memref.load %arg1[%102] : memref<21xi32, #tpu.memory_space<smem>>
    %104 = arith.index_cast %95 : i32 to index
    %c0_45 = arith.constant 0 : index
    %105 = vector.load %arg8[%104, %c0_45] : memref<16x128xf32, #tpu.memory_space<vmem>>, vector<1x128xf32>
    %106 = arith.index_cast %99 : i32 to index
    %c0_46 = arith.constant 0 : index
    %107 = vector.load %arg8[%106, %c0_46] : memref<16x128xf32, #tpu.memory_space<vmem>>, vector<1x128xf32>
    %108 = arith.index_cast %103 : i32 to index
    %c0_47 = arith.constant 0 : index
    %109 = vector.load %arg8[%108, %c0_47] : memref<16x128xf32, #tpu.memory_space<vmem>>, vector<1x128xf32>
    %cst_48 = arith.constant dense<0.000000e+00> : vector<1x128xf32>
    %110 = tpu.matmul %107, %8, %cst_48 {dimension_numbers = #tpu.dot_dimension_numbers<[1], [0], [0], [1], [0, 0, 1, 1], [], []>} : vector<1x128xf32>, vector<128x128xf32>, vector<1x128xf32> -> vector<1x128xf32>
    %cst_49 = arith.constant dense<0.000000e+00> : vector<1x128xf32>
    %111 = tpu.matmul %109, %9, %cst_49 {dimension_numbers = #tpu.dot_dimension_numbers<[1], [0], [0], [1], [0, 0, 1, 1], [], []>} : vector<1x128xf32>, vector<128x128xf32>, vector<1x128xf32> -> vector<1x128xf32>
    %112 = vector.broadcast %110 : vector<1x128xf32> to vector<8x128xf32>
    %113 = arith.addf %7, %112 : vector<8x128xf32>
    %114 = vector.broadcast %111 : vector<1x128xf32> to vector<8x128xf32>
    %115 = arith.addf %113, %114 : vector<8x128xf32>
    %cst_50 = arith.constant dense<0xFF800000> : vector<8xf32>
    %116 = vector.multi_reduction <maximumf>, %115, %cst_50 [1] : vector<8x128xf32> to vector<8xf32>
    %117 = vector.shape_cast %116 : vector<8xf32> to vector<8x1xf32>
    %118 = vector.broadcast %117 : vector<8x1xf32> to vector<8x128xf32>
    %119 = arith.subf %115, %118 : vector<8x128xf32>
    %120 = math.exp %119 : vector<8x128xf32>
    %cst_51 = arith.constant dense<0.000000e+00> : vector<8xf32>
    %121 = vector.multi_reduction <add>, %120, %cst_51 [1] : vector<8x128xf32> to vector<8xf32>
    %122 = vector.shape_cast %121 : vector<8xf32> to vector<8x1xf32>
    %123 = math.log %122 : vector<8x1xf32>
    %124 = arith.addf %117, %123 : vector<8x1xf32>
    %125 = vector.broadcast %124 : vector<8x1xf32> to vector<8x128xf32>
    %126 = arith.mulf %125, %14 : vector<8x128xf32>
    %cst_52 = arith.constant dense<0.000000e+00> : vector<128xf32>
    %127 = vector.multi_reduction <add>, %126, %cst_52 [0] : vector<8x128xf32> to vector<128xf32>
    %128 = vector.shape_cast %127 : vector<128xf32> to vector<1x128xf32>
    %129 = arith.addf %105, %128 : vector<1x128xf32>
    %130 = arith.index_cast %95 : i32 to index
    %c0_53 = arith.constant 0 : index
    %131 = vector.load %arg8[%130, %c0_53] : memref<16x128xf32, #tpu.memory_space<vmem>>, vector<1x128xf32>
    tpu.vector_store %arg8[%130, %c0_53], %129 {strides = array<i32>} : memref<16x128xf32, #tpu.memory_space<vmem>>, vector<1x128xf32>,
    %c3_i32_54 = arith.constant 3 : i32
    %c3_i32_55 = arith.constant 3 : i32
    %132 = arith.muli %c3_i32_55, %c3_i32_54 : i32
    %133 = arith.index_cast %132 : i32 to index
    %134 = memref.load %arg1[%133] : memref<21xi32, #tpu.memory_space<smem>>
    %c3_i32_56 = arith.constant 3 : i32
    %135 = arith.muli %c3_i32_56, %c3_i32_54 : i32
    %c1_i32_57 = arith.constant 1 : i32
    %136 = arith.addi %135, %c1_i32_57 : i32
    %137 = arith.index_cast %136 : i32 to index
    %138 = memref.load %arg1[%137] : memref<21xi32, #tpu.memory_space<smem>>
    %c3_i32_58 = arith.constant 3 : i32
    %139 = arith.muli %c3_i32_58, %c3_i32_54 : i32
    %c2_i32_59 = arith.constant 2 : i32
    %140 = arith.addi %139, %c2_i32_59 : i32
    %141 = arith.index_cast %140 : i32 to index
    %142 = memref.load %arg1[%141] : memref<21xi32, #tpu.memory_space<smem>>
    %143 = arith.index_cast %134 : i32 to index
    %c0_60 = arith.constant 0 : index
    %144 = vector.load %arg8[%143, %c0_60] : memref<16x128xf32, #tpu.memory_space<vmem>>, vector<1x128xf32>
    %145 = arith.index_cast %138 : i32 to index
    %c0_61 = arith.constant 0 : index
    %146 = vector.load %arg8[%145, %c0_61] : memref<16x128xf32, #tpu.memory_space<vmem>>, vector<1x128xf32>
    %147 = arith.index_cast %142 : i32 to index
    %c0_62 = arith.constant 0 : index
    %148 = vector.load %arg8[%147, %c0_62] : memref<16x128xf32, #tpu.memory_space<vmem>>, vector<1x128xf32>
    %cst_63 = arith.constant dense<0.000000e+00> : vector<1x128xf32>
    %149 = tpu.matmul %146, %8, %cst_63 {dimension_numbers = #tpu.dot_dimension_numbers<[1], [0], [0], [1], [0, 0, 1, 1], [], []>} : vector<1x128xf32>, vector<128x128xf32>, vector<1x128xf32> -> vector<1x128xf32>
    %cst_64 = arith.constant dense<0.000000e+00> : vector<1x128xf32>
    %150 = tpu.matmul %148, %9, %cst_64 {dimension_numbers = #tpu.dot_dimension_numbers<[1], [0], [0], [1], [0, 0, 1, 1], [], []>} : vector<1x128xf32>, vector<128x128xf32>, vector<1x128xf32> -> vector<1x128xf32>
    %151 = vector.broadcast %149 : vector<1x128xf32> to vector<8x128xf32>
    %152 = arith.addf %7, %151 : vector<8x128xf32>
    %153 = vector.broadcast %150 : vector<1x128xf32> to vector<8x128xf32>
    %154 = arith.addf %152, %153 : vector<8x128xf32>
    %cst_65 = arith.constant dense<0xFF800000> : vector<8xf32>
    %155 = vector.multi_reduction <maximumf>, %154, %cst_65 [1] : vector<8x128xf32> to vector<8xf32>
    %156 = vector.shape_cast %155 : vector<8xf32> to vector<8x1xf32>
    %157 = vector.broadcast %156 : vector<8x1xf32> to vector<8x128xf32>
    %158 = arith.subf %154, %157 : vector<8x128xf32>
    %159 = math.exp %158 : vector<8x128xf32>
    %cst_66 = arith.constant dense<0.000000e+00> : vector<8xf32>
    %160 = vector.multi_reduction <add>, %159, %cst_66 [1] : vector<8x128xf32> to vector<8xf32>
    %161 = vector.shape_cast %160 : vector<8xf32> to vector<8x1xf32>
    %162 = math.log %161 : vector<8x1xf32>
    %163 = arith.addf %156, %162 : vector<8x1xf32>
    %164 = vector.broadcast %163 : vector<8x1xf32> to vector<8x128xf32>
    %165 = arith.mulf %164, %14 : vector<8x128xf32>
    %cst_67 = arith.constant dense<0.000000e+00> : vector<128xf32>
    %166 = vector.multi_reduction <add>, %165, %cst_67 [0] : vector<8x128xf32> to vector<128xf32>
    %167 = vector.shape_cast %166 : vector<128xf32> to vector<1x128xf32>
    %168 = arith.addf %144, %167 : vector<1x128xf32>
    %169 = arith.index_cast %134 : i32 to index
    %c0_68 = arith.constant 0 : index
    %170 = vector.load %arg8[%169, %c0_68] : memref<16x128xf32, #tpu.memory_space<vmem>>, vector<1x128xf32>
    tpu.vector_store %arg8[%169, %c0_68], %168 {strides = array<i32>} : memref<16x128xf32, #tpu.memory_space<vmem>>, vector<1x128xf32>,
    %c4_i32 = arith.constant 4 : i32
    %c3_i32_69 = arith.constant 3 : i32
    %171 = arith.muli %c3_i32_69, %c4_i32 : i32
    %172 = arith.index_cast %171 : i32 to index
    %173 = memref.load %arg1[%172] : memref<21xi32, #tpu.memory_space<smem>>
    %c3_i32_70 = arith.constant 3 : i32
    %174 = arith.muli %c3_i32_70, %c4_i32 : i32
    %c1_i32_71 = arith.constant 1 : i32
    %175 = arith.addi %174, %c1_i32_71 : i32
    %176 = arith.index_cast %175 : i32 to index
    %177 = memref.load %arg1[%176] : memref<21xi32, #tpu.memory_space<smem>>
    %c3_i32_72 = arith.constant 3 : i32
    %178 = arith.muli %c3_i32_72, %c4_i32 : i32
    %c2_i32_73 = arith.constant 2 : i32
    %179 = arith.addi %178, %c2_i32_73 : i32
    %180 = arith.index_cast %179 : i32 to index
    %181 = memref.load %arg1[%180] : memref<21xi32, #tpu.memory_space<smem>>
    %182 = arith.index_cast %173 : i32 to index
    %c0_74 = arith.constant 0 : index
    %183 = vector.load %arg8[%182, %c0_74] : memref<16x128xf32, #tpu.memory_space<vmem>>, vector<1x128xf32>
    %184 = arith.index_cast %177 : i32 to index
    %c0_75 = arith.constant 0 : index
    %185 = vector.load %arg8[%184, %c0_75] : memref<16x128xf32, #tpu.memory_space<vmem>>, vector<1x128xf32>
    %186 = arith.index_cast %181 : i32 to index
    %c0_76 = arith.constant 0 : index
    %187 = vector.load %arg8[%186, %c0_76] : memref<16x128xf32, #tpu.memory_space<vmem>>, vector<1x128xf32>
    %cst_77 = arith.constant dense<0.000000e+00> : vector<1x128xf32>
    %188 = tpu.matmul %185, %8, %cst_77 {dimension_numbers = #tpu.dot_dimension_numbers<[1], [0], [0], [1], [0, 0, 1, 1], [], []>} : vector<1x128xf32>, vector<128x128xf32>, vector<1x128xf32> -> vector<1x128xf32>
    %cst_78 = arith.constant dense<0.000000e+00> : vector<1x128xf32>
    %189 = tpu.matmul %187, %9, %cst_78 {dimension_numbers = #tpu.dot_dimension_numbers<[1], [0], [0], [1], [0, 0, 1, 1], [], []>} : vector<1x128xf32>, vector<128x128xf32>, vector<1x128xf32> -> vector<1x128xf32>
    %190 = vector.broadcast %188 : vector<1x128xf32> to vector<8x128xf32>
    %191 = arith.addf %7, %190 : vector<8x128xf32>
    %192 = vector.broadcast %189 : vector<1x128xf32> to vector<8x128xf32>
    %193 = arith.addf %191, %192 : vector<8x128xf32>
    %cst_79 = arith.constant dense<0xFF800000> : vector<8xf32>
    %194 = vector.multi_reduction <maximumf>, %193, %cst_79 [1] : vector<8x128xf32> to vector<8xf32>
    %195 = vector.shape_cast %194 : vector<8xf32> to vector<8x1xf32>
    %196 = vector.broadcast %195 : vector<8x1xf32> to vector<8x128xf32>
    %197 = arith.subf %193, %196 : vector<8x128xf32>
    %198 = math.exp %197 : vector<8x128xf32>
    %cst_80 = arith.constant dense<0.000000e+00> : vector<8xf32>
    %199 = vector.multi_reduction <add>, %198, %cst_80 [1] : vector<8x128xf32> to vector<8xf32>
    %200 = vector.shape_cast %199 : vector<8xf32> to vector<8x1xf32>
    %201 = math.log %200 : vector<8x1xf32>
    %202 = arith.addf %195, %201 : vector<8x1xf32>
    %203 = vector.broadcast %202 : vector<8x1xf32> to vector<8x128xf32>
    %204 = arith.mulf %203, %14 : vector<8x128xf32>
    %cst_81 = arith.constant dense<0.000000e+00> : vector<128xf32>
    %205 = vector.multi_reduction <add>, %204, %cst_81 [0] : vector<8x128xf32> to vector<128xf32>
    %206 = vector.shape_cast %205 : vector<128xf32> to vector<1x128xf32>
    %207 = arith.addf %183, %206 : vector<1x128xf32>
    %208 = arith.index_cast %173 : i32 to index
    %c0_82 = arith.constant 0 : index
    %209 = vector.load %arg8[%208, %c0_82] : memref<16x128xf32, #tpu.memory_space<vmem>>, vector<1x128xf32>
    tpu.vector_store %arg8[%208, %c0_82], %207 {strides = array<i32>} : memref<16x128xf32, #tpu.memory_space<vmem>>, vector<1x128xf32>,
    %c5_i32 = arith.constant 5 : i32
    %c3_i32_83 = arith.constant 3 : i32
    %210 = arith.muli %c3_i32_83, %c5_i32 : i32
    %211 = arith.index_cast %210 : i32 to index
    %212 = memref.load %arg1[%211] : memref<21xi32, #tpu.memory_space<smem>>
    %c3_i32_84 = arith.constant 3 : i32
    %213 = arith.muli %c3_i32_84, %c5_i32 : i32
    %c1_i32_85 = arith.constant 1 : i32
    %214 = arith.addi %213, %c1_i32_85 : i32
    %215 = arith.index_cast %214 : i32 to index
    %216 = memref.load %arg1[%215] : memref<21xi32, #tpu.memory_space<smem>>
    %c3_i32_86 = arith.constant 3 : i32
    %217 = arith.muli %c3_i32_86, %c5_i32 : i32
    %c2_i32_87 = arith.constant 2 : i32
    %218 = arith.addi %217, %c2_i32_87 : i32
    %219 = arith.index_cast %218 : i32 to index
    %220 = memref.load %arg1[%219] : memref<21xi32, #tpu.memory_space<smem>>
    %221 = arith.index_cast %212 : i32 to index
    %c0_88 = arith.constant 0 : index
    %222 = vector.load %arg8[%221, %c0_88] : memref<16x128xf32, #tpu.memory_space<vmem>>, vector<1x128xf32>
    %223 = arith.index_cast %216 : i32 to index
    %c0_89 = arith.constant 0 : index
    %224 = vector.load %arg8[%223, %c0_89] : memref<16x128xf32, #tpu.memory_space<vmem>>, vector<1x128xf32>
    %225 = arith.index_cast %220 : i32 to index
    %c0_90 = arith.constant 0 : index
    %226 = vector.load %arg8[%225, %c0_90] : memref<16x128xf32, #tpu.memory_space<vmem>>, vector<1x128xf32>
    %cst_91 = arith.constant dense<0.000000e+00> : vector<1x128xf32>
    %227 = tpu.matmul %224, %8, %cst_91 {dimension_numbers = #tpu.dot_dimension_numbers<[1], [0], [0], [1], [0, 0, 1, 1], [], []>} : vector<1x128xf32>, vector<128x128xf32>, vector<1x128xf32> -> vector<1x128xf32>
    %cst_92 = arith.constant dense<0.000000e+00> : vector<1x128xf32>
    %228 = tpu.matmul %226, %9, %cst_92 {dimension_numbers = #tpu.dot_dimension_numbers<[1], [0], [0], [1], [0, 0, 1, 1], [], []>} : vector<1x128xf32>, vector<128x128xf32>, vector<1x128xf32> -> vector<1x128xf32>
    %229 = vector.broadcast %227 : vector<1x128xf32> to vector<8x128xf32>
    %230 = arith.addf %7, %229 : vector<8x128xf32>
    %231 = vector.broadcast %228 : vector<1x128xf32> to vector<8x128xf32>
    %232 = arith.addf %230, %231 : vector<8x128xf32>
    %cst_93 = arith.constant dense<0xFF800000> : vector<8xf32>
    %233 = vector.multi_reduction <maximumf>, %232, %cst_93 [1] : vector<8x128xf32> to vector<8xf32>
    %234 = vector.shape_cast %233 : vector<8xf32> to vector<8x1xf32>
    %235 = vector.broadcast %234 : vector<8x1xf32> to vector<8x128xf32>
    %236 = arith.subf %232, %235 : vector<8x128xf32>
    %237 = math.exp %236 : vector<8x128xf32>
    %cst_94 = arith.constant dense<0.000000e+00> : vector<8xf32>
    %238 = vector.multi_reduction <add>, %237, %cst_94 [1] : vector<8x128xf32> to vector<8xf32>
    %239 = vector.shape_cast %238 : vector<8xf32> to vector<8x1xf32>
    %240 = math.log %239 : vector<8x1xf32>
    %241 = arith.addf %234, %240 : vector<8x1xf32>
    %242 = vector.broadcast %241 : vector<8x1xf32> to vector<8x128xf32>
    %243 = arith.mulf %242, %14 : vector<8x128xf32>
    %cst_95 = arith.constant dense<0.000000e+00> : vector<128xf32>
    %244 = vector.multi_reduction <add>, %243, %cst_95 [0] : vector<8x128xf32> to vector<128xf32>
    %245 = vector.shape_cast %244 : vector<128xf32> to vector<1x128xf32>
    %246 = arith.addf %222, %245 : vector<1x128xf32>
    %247 = arith.index_cast %212 : i32 to index
    %c0_96 = arith.constant 0 : index
    %248 = vector.load %arg8[%247, %c0_96] : memref<16x128xf32, #tpu.memory_space<vmem>>, vector<1x128xf32>
    tpu.vector_store %arg8[%247, %c0_96], %246 {strides = array<i32>} : memref<16x128xf32, #tpu.memory_space<vmem>>, vector<1x128xf32>,
    %c6_i32 = arith.constant 6 : i32
    %c3_i32_97 = arith.constant 3 : i32
    %249 = arith.muli %c3_i32_97, %c6_i32 : i32
    %250 = arith.index_cast %249 : i32 to index
    %251 = memref.load %arg1[%250] : memref<21xi32, #tpu.memory_space<smem>>
    %c3_i32_98 = arith.constant 3 : i32
    %252 = arith.muli %c3_i32_98, %c6_i32 : i32
    %c1_i32_99 = arith.constant 1 : i32
    %253 = arith.addi %252, %c1_i32_99 : i32
    %254 = arith.index_cast %253 : i32 to index
    %255 = memref.load %arg1[%254] : memref<21xi32, #tpu.memory_space<smem>>
    %c3_i32_100 = arith.constant 3 : i32
    %256 = arith.muli %c3_i32_100, %c6_i32 : i32
    %c2_i32_101 = arith.constant 2 : i32
    %257 = arith.addi %256, %c2_i32_101 : i32
    %258 = arith.index_cast %257 : i32 to index
    %259 = memref.load %arg1[%258] : memref<21xi32, #tpu.memory_space<smem>>
    %260 = arith.index_cast %251 : i32 to index
    %c0_102 = arith.constant 0 : index
    %261 = vector.load %arg8[%260, %c0_102] : memref<16x128xf32, #tpu.memory_space<vmem>>, vector<1x128xf32>
    %262 = arith.index_cast %255 : i32 to index
    %c0_103 = arith.constant 0 : index
    %263 = vector.load %arg8[%262, %c0_103] : memref<16x128xf32, #tpu.memory_space<vmem>>, vector<1x128xf32>
    %264 = arith.index_cast %259 : i32 to index
    %c0_104 = arith.constant 0 : index
    %265 = vector.load %arg8[%264, %c0_104] : memref<16x128xf32, #tpu.memory_space<vmem>>, vector<1x128xf32>
    %cst_105 = arith.constant dense<0.000000e+00> : vector<1x128xf32>
    %266 = tpu.matmul %263, %8, %cst_105 {dimension_numbers = #tpu.dot_dimension_numbers<[1], [0], [0], [1], [0, 0, 1, 1], [], []>} : vector<1x128xf32>, vector<128x128xf32>, vector<1x128xf32> -> vector<1x128xf32>
    %cst_106 = arith.constant dense<0.000000e+00> : vector<1x128xf32>
    %267 = tpu.matmul %265, %9, %cst_106 {dimension_numbers = #tpu.dot_dimension_numbers<[1], [0], [0], [1], [0, 0, 1, 1], [], []>} : vector<1x128xf32>, vector<128x128xf32>, vector<1x128xf32> -> vector<1x128xf32>
    %268 = vector.broadcast %266 : vector<1x128xf32> to vector<8x128xf32>
    %269 = arith.addf %7, %268 : vector<8x128xf32>
    %270 = vector.broadcast %267 : vector<1x128xf32> to vector<8x128xf32>
    %271 = arith.addf %269, %270 : vector<8x128xf32>
    %cst_107 = arith.constant dense<0xFF800000> : vector<8xf32>
    %272 = vector.multi_reduction <maximumf>, %271, %cst_107 [1] : vector<8x128xf32> to vector<8xf32>
    %273 = vector.shape_cast %272 : vector<8xf32> to vector<8x1xf32>
    %274 = vector.broadcast %273 : vector<8x1xf32> to vector<8x128xf32>
    %275 = arith.subf %271, %274 : vector<8x128xf32>
    %276 = math.exp %275 : vector<8x128xf32>
    %cst_108 = arith.constant dense<0.000000e+00> : vector<8xf32>
    %277 = vector.multi_reduction <add>, %276, %cst_108 [1] : vector<8x128xf32> to vector<8xf32>
    %278 = vector.shape_cast %277 : vector<8xf32> to vector<8x1xf32>
    %279 = math.log %278 : vector<8x1xf32>
    %280 = arith.addf %273, %279 : vector<8x1xf32>
    %281 = vector.broadcast %280 : vector<8x1xf32> to vector<8x128xf32>
    %282 = arith.mulf %281, %14 : vector<8x128xf32>
    %cst_109 = arith.constant dense<0.000000e+00> : vector<128xf32>
    %283 = vector.multi_reduction <add>, %282, %cst_109 [0] : vector<8x128xf32> to vector<128xf32>
    %284 = vector.shape_cast %283 : vector<128xf32> to vector<1x128xf32>
    %285 = arith.addf %261, %284 : vector<1x128xf32>
    %286 = arith.index_cast %251 : i32 to index
    %c0_110 = arith.constant 0 : index
    %287 = vector.load %arg8[%286, %c0_110] : memref<16x128xf32, #tpu.memory_space<vmem>>, vector<1x128xf32>
    tpu.vector_store %arg8[%286, %c0_110], %285 {strides = array<i32>} : memref<16x128xf32, #tpu.memory_space<vmem>>, vector<1x128xf32>,
    %c7_i32 = arith.constant 7 : i32
    return
  }
  func.func @transform_0(%arg0: i32, %arg1: memref<21xi32, #tpu.memory_space<smem>>) -> (i32, i32) {
    %c0_i32 = arith.constant 0 : i32
    %c0_i32_0 = arith.constant 0 : i32
    %c0_i32_1 = arith.constant 0 : i32
    return %c0_i32, %c0_i32_0 : i32, i32
  }
  func.func @transform_1(%arg0: i32, %arg1: memref<21xi32, #tpu.memory_space<smem>>) -> (i32, i32) {
    %c0_i32 = arith.constant 0 : i32
    %c0_i32_0 = arith.constant 0 : i32
    %c0_i32_1 = arith.constant 0 : i32
    return %c0_i32, %c0_i32_0 : i32, i32
  }
  func.func @transform_2(%arg0: i32, %arg1: memref<21xi32, #tpu.memory_space<smem>>) -> (i32, i32) {
    %c0_i32 = arith.constant 0 : i32
    %c0_i32_0 = arith.constant 0 : i32
    %c0_i32_1 = arith.constant 0 : i32
    return %c0_i32, %c0_i32_0 : i32, i32
  }
  func.func @transform_3(%arg0: i32, %arg1: memref<21xi32, #tpu.memory_space<smem>>) -> (i32, i32) {
    %c0_i32 = arith.constant 0 : i32
    %c0_i32_0 = arith.constant 0 : i32
    %c0_i32_1 = arith.constant 0 : i32
    return %c0_i32, %c0_i32_0 : i32, i32
  }
  func.func @transform_4(%arg0: i32, %arg1: memref<21xi32, #tpu.memory_space<smem>>) -> (i32, i32) {
    %c0_i32 = arith.constant 0 : i32
    %c0_i32_0 = arith.constant 0 : i32
    %c0_i32_1 = arith.constant 0 : i32
    return %c0_i32, %c0_i32_0 : i32, i32
  }
  func.func @transform_5(%arg0: i32, %arg1: memref<21xi32, #tpu.memory_space<smem>>) -> (i32, i32) {
    %c0_i32 = arith.constant 0 : i32
    %c0_i32_0 = arith.constant 0 : i32
    %c0_i32_1 = arith.constant 0 : i32
    return %c0_i32, %c0_i32_0 : i32, i32
  }
  func.func @transform_6(%arg0: i32, %arg1: memref<21xi32, #tpu.memory_space<smem>>) -> (i32, i32) {
    %c0_i32 = arith.constant 0 : i32
    %c0_i32_0 = arith.constant 0 : i32
    %c0_i32_1 = arith.constant 0 : i32
    return %c0_i32, %c0_i32_0 : i32, i32
  }
}

</mosaic_0001>

<bundles_post_ra>
// kernel: binary_tree_inside.1
= control target key start
LH: loop header
LB: loop body
LE: loop exit
PB: predicated region body
PF: predicated region fallthrough
CT: control target
= control target key end

     0   :  { %s711_s27 = smov [#allocation3]   ;;  %s1259_s0 = inlined_call_operand.vmem [shape: s32[21], index: 0, kind: input, shape index: {}]   ;;  %s1260_s1 = inlined_call_operand.vmem [shape: f32[16,32], index: 1, kind: input, shape index: {}]   ;;  %s1261_s2 = inlined_call_operand.vmem [shape: f32[32,128], index: 2, kind: input, shape index: {}]   ;;  %s1262_s3 = inlined_call_operand.vmem [shape: f32[1,128], index: 3, kind: input, shape index: {}]   ;;  %s1263_s4 = inlined_call_operand.vmem [shape: f32[8,128], index: 4, kind: input, shape index: {}]   ;;  %s1264_s5 = inlined_call_operand.vmem [shape: f32[128,128], index: 5, kind: input, shape index: {}]   ;;  %s1265_s6 = inlined_call_operand.vmem [shape: f32[128,128], index: 6, kind: input, shape index: {}]   ;;  %s1266_s7 = inlined_call_operand.vmem [shape: f32[16,128], index: 7, kind: output, shape index: {}]  }
   0x1   :  { %s13_s26 = sshll.u32 %s1259_s0, 4  ;;  %s14_s26 = int_to_ptr.vmem [resolvable:$true] %s13_s26 }
   0x2   :  { %16 = dma.vmem_to_smem %s14_s26, 16, %s711_s27, [#allocation2] }
   0x3   :  { %709 = dma.done.wait [#allocation2], 16 }
   0x4   :  { %710 = vsyncadd [#allocation2], 4294967280 }
   0x5   :  { %19 = sfence }
   0x6   :  { %v37_v0 = vld [vmem:[%s1261_s2 + $0x18] sm:$0xff]  ;;  %v36_v1 = vld [vmem:[%s1261_s2 + $0x10] sm:$0xff]  ;;  %v35_v2 = vld [vmem:[%s1261_s2 + $0x8] sm:$0xff]  ;;  %vm42_vm0 = vcmask 261120   ;;  %s1042_s28 = sld [smem:[#allocation3 + $0x1]]  ;;  %v107_v56 = vlaneseq  ;;  %v712_v62 = vmov 0.0  }
   0x7   :  { %61 = vmatpush.msra.mxu0 %v37_v0  ;;  %v768_v3 = vld [vmem:[%s1264_s5 + $0x78] sm:$0xff]  ;;  %v778_v5 = vld [vmem:[%s1264_s5 + $0x70] sm:$0xff]  ;;  %v34_v7 = vld [vmem:[%s1261_s2] sm:$0xff]  ;;  %s1046_s29 = sld [smem:[#allocation3 + $0x2]] }
   0x8   :  { %v773_v4 = vld [vmem:[%s1265_s6 + $0x78] sm:$0xff]  ;;  %123 = vmatpush.msra.mxu1 %v768_v3  ;;  %v784_v6 = vld [vmem:[%s1265_s6 + $0x70] sm:$0xff]  ;;  %v793_v8 = vld [vmem:[%s1264_s5 + $0x68] sm:$0xff]  ;;  %195 = vmatpush.msra.mxu3 %v768_v3  ;;  %v108_v58 = vshrl.u32 %v107_v56, 7  ;;  %v110_v59 = vand.u32 127, %v107_v56  ;;  %s649_s18 = sld [smem:[#allocation3 + $0x4]] }
   0x9   :  { %62 = vmatpush.msra.mxu0 %v36_v1  ;;  %143 = vmatpush.msra.mxu2 %v773_v4  ;;  %v32_v9 = vld [vmem:[%s1260_s1] sm:$0xff]  ;;  %v803_v10 = vld [vmem:[%s1265_s6 + $0x68] sm:$0xff]  ;;  %v823_v13 = vld [vmem:[%s1264_s5 + $0x58] sm:$0xff]  ;;  %s650_s19 = sld [smem:[#allocation3 + $0x5]] }
   0xa   :  { %124 = vmatpush.msra.mxu1 %v778_v5  ;;  %v809_v11 = vld [vmem:[%s1264_s5 + $0x60] sm:$0xff]  ;;  %196 = vmatpush.msra.mxu3 %v778_v5  ;;  %v829_v14 = vld [vmem:[%s1265_s6 + $0x58] sm:$0xff]  ;;  %v836_v15 = vld [vmem:[%s1264_s5 + $0x50] sm:$0xff]  ;;  %vm111_vm1 = vcmp.eq.s32.totalorder %v108_v58, %v110_v59  ;;  %s648_s2 = sld [smem:[#allocation3 + $0x3]] }
   0xb   :  { %63 = vmatpush.msra.mxu0 %v35_v2  ;;  %144 = vmatpush.msra.mxu2 %v784_v6  ;;  %v816_v12 = vld [vmem:[%s1265_s6 + $0x60] sm:$0xff]  ;;  %v843_v16 = vld [vmem:[%s1265_s6 + $0x50] sm:$0xff]  ;;  %v33_v17 = vld [vmem:[%s1260_s1 + $0x8] sm:$0xff]  ;;  %v1123_v63 = vsel %vm111_vm1, 1.0, %v712_v62  ;;  %s653_s27 = sld [smem:[#allocation3 + $0x8]] }
   0xc   :  { %125 = vmatpush.msra.mxu1 %v793_v8  ;;  %197 = vmatpush.msra.mxu3 %v793_v8  ;;  %v863_v18 = vld [vmem:[%s1264_s5 + $0x48] sm:$0xff]  ;;  %v875_v20 = vld [vmem:[%s1264_s5 + $0x40] sm:$0xff]  ;;  %v889_v22 = vld [vmem:[%s1264_s5 + $0x38] sm:$0xff]  ;;  %s119_s0 = scalar_lea.vmem %s1266_s7, %s1042_s28  ;;  %s655_s14 = sld [smem:[#allocation3 + $0xa]] }
   0xd   :  { %64 = vmatpush.msra.mxu0 %v34_v7  ;;  %145 = vmatpush.msra.mxu2 %v803_v10  ;;  %v868_v19 = vld [vmem:[%s1265_s6 + $0x48] sm:$0xff]  ;;  %v880_v21 = vld [vmem:[%s1265_s6 + $0x40] sm:$0xff]  ;;  %v894_v23 = vld [vmem:[%s1265_s6 + $0x38] sm:$0xff]  ;;  %s121_s13 = scalar_lea.vmem %s1266_s7, %s1046_s29  ;;  %s656_s15 = sld [smem:[#allocation3 + $0xb]] }
   0xe   :  { %643 = vmatmul.msk.f32.vlgmr.msra.gmra.mxu0 %vm42_vm0, %v32_v9  ;;  %126 = vmatpush.msra.mxu1 %v809_v11  ;;  %v899_v24 = vld [vmem:[%s1264_s5 + $0x30] sm:$0xff]  ;;  %v917_v26 = vld [vmem:[%s1264_s5 + $0x28] sm:$0xff]  ;;  %v931_v28 = vld [vmem:[%s1264_s5 + $0x20] sm:$0xff]  ;;  %s191_s22 = scalar_lea.vmem %s1266_s7, %s649_s18  ;;  %s654_s20 = sld [smem:[#allocation3 + $0x9]] }
   0xf   :  { %215 = vmatpush.msrb.mxu0 %v773_v4  ;;  %146 = vmatpush.msra.mxu2 %v816_v12  ;;  %v908_v25 = vld [vmem:[%s1265_s6 + $0x30] sm:$0xff]  ;;  %v922_v27 = vld [vmem:[%s1265_s6 + $0x28] sm:$0xff]  ;;  %v936_v29 = vld [vmem:[%s1265_s6 + $0x20] sm:$0xff]  ;;  %s193_s25 = scalar_lea.vmem %s1266_s7, %s650_s19  ;;  %s658_s24 = sld [smem:[#allocation3 + $0xd]] }
  0x10   :  { %127 = vmatpush.msra.mxu1 %v823_v13  ;;  %198 = vmatpush.msra.mxu3 %v809_v11  ;;  %v945_v30 = vld [vmem:[%s1264_s5 + $0x18] sm:$0xff]  ;;  %v955_v32 = vld [vmem:[%s1264_s5 + $0x10] sm:$0xff]  ;;  %v969_v34 = vld [vmem:[%s1264_s5 + $0x8] sm:$0xff]  ;;  %s657_s28 = sld [smem:[#allocation3 + $0xc]] }
  0x11   :  { %216 = vmatpush.msrb.mxu0 %v784_v6  ;;  %147 = vmatpush.msra.mxu2 %v829_v14  ;;  %v950_v31 = vld [vmem:[%s1265_s6 + $0x18] sm:$0xff]  ;;  %v964_v33 = vld [vmem:[%s1265_s6 + $0x10] sm:$0xff]  ;;  %v974_v35 = vld [vmem:[%s1265_s6 + $0x8] sm:$0xff]  ;;  %s265_s10 = scalar_lea.vmem %s1266_s7, %s653_s27  ;;  %s661_s9 = sld [smem:[#allocation3 + $0x10]] }
  0x12   :  { %128 = vmatpush.msra.mxu1 %v836_v15  ;;  %199 = vmatpush.msra.mxu3 %v823_v13  ;;  %v983_v36 = vld [vmem:[%s1264_s5] sm:$0xff]  ;;  %s335_s16 = scalar_lea.vmem %s1266_s7, %s655_s14  ;;  %s664_s18 = sld [smem:[#allocation3 + $0x13]] }
  0x13   :  { %217 = vmatpush.msrb.mxu0 %v803_v10  ;;  %148 = vmatpush.msra.mxu2 %v843_v16  ;;  %v988_v37 = vld [vmem:[%s1265_s6] sm:$0xff]  ;;  %s189_s6 = scalar_lea.vmem %s1266_s7, %s648_s2  ;;  %s337_s19 = scalar_lea.vmem %s1266_s7, %s656_s15 }
  0x14   :  { %200 = vmatpush.msra.mxu3 %v836_v15  ;;  %129 = vmatpush.msra.mxu1 %v863_v18  ;;  %v668_v38 = vld [vmem:[%s1262_s3] ss:$0 sm:$0xff]  ;;  %s652_s3 = sld [smem:[#allocation3 + $0x7]]  ;;  %s333_s23 = scalar_lea.vmem %s1266_s7, %s654_s20 }
  0x15   :  { %218 = vmatpush.msrb.mxu0 %v816_v12  ;;  %149 = vmatpush.msra.mxu2 %v868_v19  ;;  %v1120_v47 = vld [vmem:[%s1263_s4] sm:$0xff]  ;;  %s114_s4 = sld [smem:[#allocation3]]  ;;  %s407_s5 = scalar_lea.vmem %s1266_s7, %s658_s24 }
  0x16   :  { %644 = vmatmul.msk.f32.gmra.mxu0 %vm42_vm0, %v33_v17  ;;  %201 = vmatpush.msra.mxu3 %v863_v18  ;;  %s405_s8 = scalar_lea.vmem %s1266_s7, %s657_s28  ;;  %s663_s2 = sld [smem:[#allocation3 + $0x12]] }
  0x17   :  { %219 = vmatpush.msrb.mxu0 %v829_v14  ;;  %130 = vmatpush.msra.mxu1 %v875_v20  ;;  %s479_s12 = scalar_lea.vmem %s1266_s7, %s661_s9 }
  0x18   :  { %150 = vmatpush.msra.mxu2 %v880_v21  ;;  %202 = vmatpush.msra.mxu3 %v875_v20 }
  0x19   :  { %220 = vmatpush.msrb.mxu0 %v843_v16  ;;  %131 = vmatpush.msra.mxu1 %v889_v22 }
  0x1a   :  { %151 = vmatpush.msra.mxu2 %v894_v23  ;;  %203 = vmatpush.msra.mxu3 %v889_v22  ;;  %s263_s30 = scalar_lea.vmem %s1266_s7, %s652_s3 }
  0x1b   :  { %221 = vmatpush.msrb.mxu0 %v868_v19  ;;  %132 = vmatpush.msra.mxu1 %v899_v24  ;;  %s117_s17 = scalar_lea.vmem %s1266_s7, %s114_s4  ;;  %s660_s4 = sld [smem:[#allocation3 + $0xf]] }
  0x1c   :  { %152 = vmatpush.msra.mxu2 %v908_v25  ;;  %204 = vmatpush.msra.mxu3 %v899_v24 }
  0x1d   :  { %222 = vmatpush.msrb.mxu0 %v880_v21  ;;  %133 = vmatpush.msra.mxu1 %v917_v26 }
  0x1e   :  { %153 = vmatpush.msra.mxu2 %v922_v27  ;;  %205 = vmatpush.msra.mxu3 %v917_v26 }
  0x1f   :  { %223 = vmatpush.msrb.mxu0 %v894_v23  ;;  %134 = vmatpush.msra.mxu1 %v931_v28 }
  0x20   :  { %154 = vmatpush.msra.mxu2 %v936_v29  ;;  %206 = vmatpush.msra.mxu3 %v931_v28 }
  0x21   :  { %224 = vmatpush.msrb.mxu0 %v908_v25  ;;  %135 = vmatpush.msra.mxu1 %v945_v30 }
  0x22   :  { %155 = vmatpush.msra.mxu2 %v950_v31  ;;  %207 = vmatpush.msra.mxu3 %v945_v30 }
  0x23   :  { %225 = vmatpush.msrb.mxu0 %v922_v27  ;;  %136 = vmatpush.msra.mxu1 %v955_v32 }
  0x24   :  { %156 = vmatpush.msra.mxu2 %v964_v33  ;;  %208 = vmatpush.msra.mxu3 %v955_v32 }
  0x25   :  { %226 = vmatpush.msrb.mxu0 %v936_v29  ;;  %137 = vmatpush.msra.mxu1 %v969_v34 }
  0x26   :  { %157 = vmatpush.msra.mxu2 %v974_v35  ;;  %209 = vmatpush.msra.mxu3 %v969_v34 }
  0x27   :  { %227 = vmatpush.msrb.mxu0 %v950_v31  ;;  %138 = vmatpush.msra.mxu1 %v983_v36 }
  0x28   :  { %158 = vmatpush.msra.mxu2 %v988_v37  ;;  %210 = vmatpush.msra.mxu3 %v983_v36 }
  0x29   :  { %228 = vmatpush.msrb.mxu0 %v964_v33  ;;  %267 = vmatpush.msrb.mxu1 %v768_v3 }
  0x2a   :  { %287 = vmatpush.msrb.mxu2 %v773_v4  ;;  %339 = vmatpush.msrb.mxu3 %v768_v3 }
  0x2b   :  { %229 = vmatpush.msrb.mxu0 %v974_v35  ;;  %268 = vmatpush.msrb.mxu1 %v778_v5 }
  0x2c   :  { %288 = vmatpush.msrb.mxu2 %v784_v6  ;;  %340 = vmatpush.msrb.mxu3 %v778_v5 }
  0x2d   :  { %230 = vmatpush.msrb.mxu0 %v988_v37  ;;  %269 = vmatpush.msrb.mxu1 %v793_v8 }
  0x2e   :  { %289 = vmatpush.msrb.mxu2 %v803_v10  ;;  %341 = vmatpush.msrb.mxu3 %v793_v8 }
  0x2f   :  { %359 = vmatpush.msra.mxu0 %v773_v4  ;;  %270 = vmatpush.msrb.mxu1 %v809_v11 }
  0x30   :  { %290 = vmatpush.msrb.mxu2 %v816_v12  ;;  %342 = vmatpush.msrb.mxu3 %v809_v11 }
  0x31   :  { %360 = vmatpush.msra.mxu0 %v784_v6  ;;  %271 = vmatpush.msrb.mxu1 %v823_v13 }
  0x32   :  { %291 = vmatpush.msrb.mxu2 %v829_v14  ;;  %343 = vmatpush.msrb.mxu3 %v823_v13 }
  0x33   :  { %361 = vmatpush.msra.mxu0 %v803_v10  ;;  %272 = vmatpush.msrb.mxu1 %v836_v15 }
  0x34   :  { %292 = vmatpush.msrb.mxu2 %v843_v16  ;;  %344 = vmatpush.msrb.mxu3 %v836_v15 }
  0x35   :  { %362 = vmatpush.msra.mxu0 %v816_v12  ;;  %273 = vmatpush.msrb.mxu1 %v863_v18 }
  0x36   :  { %293 = vmatpush.msrb.mxu2 %v868_v19  ;;  %345 = vmatpush.msrb.mxu3 %v863_v18 }
  0x37   :  { %363 = vmatpush.msra.mxu0 %v829_v14  ;;  %274 = vmatpush.msrb.mxu1 %v875_v20 }
  0x38   :  { %294 = vmatpush.msrb.mxu2 %v880_v21  ;;  %346 = vmatpush.msrb.mxu3 %v875_v20 }
  0x39   :  { %364 = vmatpush.msra.mxu0 %v843_v16  ;;  %275 = vmatpush.msrb.mxu1 %v889_v22 }
  0x3a   :  { %295 = vmatpush.msrb.mxu2 %v894_v23  ;;  %347 = vmatpush.msrb.mxu3 %v889_v22 }
  0x3b   :  { %365 = vmatpush.msra.mxu0 %v868_v19  ;;  %276 = vmatpush.msrb.mxu1 %v899_v24 }
  0x3c   :  { %296 = vmatpush.msrb.mxu2 %v908_v25  ;;  %348 = vmatpush.msrb.mxu3 %v899_v24 }
  0x3d   :  { %366 = vmatpush.msra.mxu0 %v880_v21  ;;  %277 = vmatpush.msrb.mxu1 %v917_v26 }
  0x3e   :  { %297 = vmatpush.msrb.mxu2 %v922_v27  ;;  %349 = vmatpush.msrb.mxu3 %v917_v26 }
  0x3f   :  { %367 = vmatpush.msra.mxu0 %v894_v23  ;;  %278 = vmatpush.msrb.mxu1 %v931_v28 }
  0x40   :  { %298 = vmatpush.msrb.mxu2 %v936_v29  ;;  %350 = vmatpush.msrb.mxu3 %v931_v28 }
  0x41   :  { %368 = vmatpush.msra.mxu0 %v908_v25  ;;  %279 = vmatpush.msrb.mxu1 %v945_v30 }
  0x42   :  { %299 = vmatpush.msrb.mxu2 %v950_v31  ;;  %351 = vmatpush.msrb.mxu3 %v945_v30 }
  0x43   :  { %369 = vmatpush.msra.mxu0 %v922_v27  ;;  %280 = vmatpush.msrb.mxu1 %v955_v32 }
  0x44   :  { %300 = vmatpush.msrb.mxu2 %v964_v33  ;;  %352 = vmatpush.msrb.mxu3 %v955_v32 }
  0x45   :  { %370 = vmatpush.msra.mxu0 %v936_v29  ;;  %281 = vmatpush.msrb.mxu1 %v969_v34 }
  0x46   :  { %301 = vmatpush.msrb.mxu2 %v974_v35  ;;  %353 = vmatpush.msrb.mxu3 %v969_v34 }
  0x47   :  { %371 = vmatpush.msra.mxu0 %v950_v31  ;;  %282 = vmatpush.msrb.mxu1 %v983_v36 }
  0x48   :  { %302 = vmatpush.msrb.mxu2 %v988_v37  ;;  %354 = vmatpush.msrb.mxu3 %v983_v36 }
  0x49   :  { %372 = vmatpush.msra.mxu0 %v964_v33 }
  0x4b   :  { %373 = vmatpush.msra.mxu0 %v974_v35 }
  0x4d   :  { %374 = vmatpush.msra.mxu0 %v988_v37 }
  0x8b   :  { %v66_v39 = vpop.f32.mrf.mxu0 }
  0x8c   :  { %v67_v40 = vadd.f32 %v668_v38, %v66_v39 }
  0x8e   :  { %72 = vst [vmem:[%s1266_s7] sm:$0xff] %v67_v40 }
  0x93   :  { %v69_v41 = vpop.f32.mrf.mxu0 }
  0x94   :  { %v70_v42 = vadd.f32 %v668_v38, %v69_v41 }
  0x96   :  { %73 = vst [vmem:[%s1266_s7 + $0x8] sm:$0xff] %v70_v42 }
  0x9d   :  { %v120_v43 = vld [vmem:[%s119_s0] sm:$0x1]  ;;  %s651_s0 = sld [smem:[#allocation3 + $0x6]] }
  0x9e   :  { %v122_v44 = vld [vmem:[%s121_s13] sm:$0x1]  ;;  %139 = vmatmul.f32.vlgmr.msra.gmra.mxu1 %v120_v43 }
  0x9f   :  { %159 = vmatmul.f32.vlgmr.msra.gmra.mxu2 %v122_v44  ;;  %411 = vmatpush.msra.mxu1 %v768_v3  ;;  %v118_v40 = vld [vmem:[%s117_s17] sm:$0x1] }
  0xa0   :  { %431 = vmatpush.msra.mxu2 %v773_v4 }
  0xa1   :  { %412 = vmatpush.msra.mxu1 %v778_v5 }
  0xa2   :  { %432 = vmatpush.msra.mxu2 %v784_v6 }
  0xa3   :  { %413 = vmatpush.msra.mxu1 %v793_v8  ;;  %s261_s13 = scalar_lea.vmem %s1266_s7, %s651_s0 }
  0xa4   :  { %433 = vmatpush.msra.mxu2 %v803_v10 }
  0xa5   :  { %414 = vmatpush.msra.mxu1 %v809_v11 }
  0xa6   :  { %434 = vmatpush.msra.mxu2 %v816_v12 }
  0xa7   :  { %415 = vmatpush.msra.mxu1 %v823_v13 }
  0xa8   :  { %435 = vmatpush.msra.mxu2 %v829_v14 }
  0xa9   :  { %416 = vmatpush.msra.mxu1 %v836_v15 }
  0xaa   :  { %436 = vmatpush.msra.mxu2 %v843_v16 }
  0xab   :  { %417 = vmatpush.msra.mxu1 %v863_v18 }
  0xac   :  { %437 = vmatpush.msra.mxu2 %v868_v19 }
  0xad   :  { %418 = vmatpush.msra.mxu1 %v875_v20 }
  0xae   :  { %438 = vmatpush.msra.mxu2 %v880_v21 }
  0xaf   :  { %419 = vmatpush.msra.mxu1 %v889_v22 }
  0xb0   :  { %439 = vmatpush.msra.mxu2 %v894_v23 }
  0xb1   :  { %420 = vmatpush.msra.mxu1 %v899_v24 }
  0xb2   :  { %440 = vmatpush.msra.mxu2 %v908_v25 }
  0xb3   :  { %421 = vmatpush.msra.mxu1 %v917_v26 }
  0xb4   :  { %441 = vmatpush.msra.mxu2 %v922_v27 }
  0xb5   :  { %422 = vmatpush.msra.mxu1 %v931_v28 }
  0xb6   :  { %442 = vmatpush.msra.mxu2 %v936_v29 }
  0xb7   :  { %423 = vmatpush.msra.mxu1 %v945_v30 }
  0xb8   :  { %443 = vmatpush.msra.mxu2 %v950_v31 }
  0xb9   :  { %424 = vmatpush.msra.mxu1 %v955_v32 }
  0xba   :  { %444 = vmatpush.msra.mxu2 %v964_v33 }
  0xbb   :  { %425 = vmatpush.msra.mxu1 %v969_v34 }
  0xbc   :  { %445 = vmatpush.msra.mxu2 %v974_v35 }
  0xbd   :  { %426 = vmatpush.msra.mxu1 %v983_v36 }
  0xbe   :  { %446 = vmatpush.msra.mxu2 %v988_v37 }
 0x11b   :  { %v140_v45 = vpop.f32.mrf.mxu1 }
 0x11c   :  { %v163_v46 = vperm.slane %v140_v45, 0 }
 0x11e   :  { %v164_v49 = vadd.f32 %v163_v46, %v1120_v47 }
 0x122   :  { %v160_v48 = vpop.f32.mrf.mxu2 }
 0x123   :  { %v165_v50 = vperm.slane %v160_v48, 0 }
 0x125   :  { %v166_v51 = vadd.f32 %v165_v50, %v164_v49 }
 0x127   :  { %167 = vmax.xlane.f32.xlu0 %v166_v51 }
 0x19a   :  { %v168_v52 = vpop.xlane.xlu0 %167 }
 0x19b   :  { %v169_v53 = vsub.f32 %v166_v51, %v168_v52 }
 0x19d   :  { %v170_v54 = vmul.f32 1.442695, %v169_v53 }
 0x19f   :  { %669 = vpow2.f32 %v170_v54 }
 0x1a5   :  { %v670_v55 = vpop.eup %669 }
 0x1a6   :  { %172 = vadd.xlane.f32.xlu0 %v670_v55 }
 0x219   :  { %v173_v57 = vpop.xlane.xlu0 %172 }
 0x21a   :  { %671 = vlog2.f32 %v173_v57 }
 0x220   :  { %v672_v60 = vpop.eup %671 }
 0x221   :  { %v175_v61 = vmul.f32 0.6931472, %v672_v60 }
 0x223   :  { %v176_v0 = vadd.f32 %v175_v61, %v168_v52 }
 0x225   :  { %v177_v1 = vmul.f32 %v1123_v63, %v176_v0 }
 0x227   :  { %v178_v2 = vrot.slane %v177_v1, 4 }
 0x229   :  { %v179_v7 = vadd.f32 %v178_v2, %v177_v1 }
 0x22b   :  { %v180_v9 = vrot.slane %v179_v7, 2 }
 0x22d   :  { %v181_v17 = vadd.f32 %v180_v9, %v179_v7 }
 0x22f   :  { %v182_v38 = vrot.slane %v181_v17, 1 }
 0x231   :  { %v183_v39 = vadd.f32 %v182_v38, %v181_v17 }
 0x233   :  { %v184_v41 = vadd.f32 %v183_v39, %v118_v40 }
 0x235   :  { %185 = vst [vmem:[%s117_s17] sm:$0x1] %v184_v41  ;;  %s477_s17 = scalar_lea.vmem %s1266_s7, %s660_s4 }
 0x23c   :  { %v192_v42 = vld [vmem:[%s191_s22] sm:$0x1]  ;;  %s551_s22 = scalar_lea.vmem %s1266_s7, %s664_s18 }
 0x23d   :  { %v194_v43 = vld [vmem:[%s193_s25] sm:$0x1]  ;;  %211 = vmatmul.f32.vlgmr.msra.gmra.mxu3 %v192_v42  ;;  %s659_s25 = sld [smem:[#allocation3 + $0xe]] }
 0x23e   :  { %231 = vmatmul.f32.vlgmr.msrb.gmra.mxu0 %v194_v43  ;;  %483 = vmatpush.msra.mxu3 %v768_v3  ;;  %v190_v7 = vld [vmem:[%s189_s6] sm:$0x1] }
 0x23f   :  { %503 = vmatpush.msrb.mxu0 %v773_v4 }
 0x240   :  { %484 = vmatpush.msra.mxu3 %v778_v5 }
 0x241   :  { %504 = vmatpush.msrb.mxu0 %v784_v6 }
 0x242   :  { %485 = vmatpush.msra.mxu3 %v793_v8 }
 0x243   :  { %505 = vmatpush.msrb.mxu0 %v803_v10  ;;  %s409_s27 = scalar_lea.vmem %s1266_s7, %s659_s25 }
 0x244   :  { %486 = vmatpush.msra.mxu3 %v809_v11 }
 0x245   :  { %506 = vmatpush.msrb.mxu0 %v816_v12 }
 0x246   :  { %487 = vmatpush.msra.mxu3 %v823_v13 }
 0x247   :  { %507 = vmatpush.msrb.mxu0 %v829_v14 }
 0x248   :  { %488 = vmatpush.msra.mxu3 %v836_v15 }
 0x249   :  { %508 = vmatpush.msrb.mxu0 %v843_v16 }
 0x24a   :  { %489 = vmatpush.msra.mxu3 %v863_v18 }
 0x24b   :  { %509 = vmatpush.msrb.mxu0 %v868_v19 }
 0x24c   :  { %490 = vmatpush.msra.mxu3 %v875_v20 }
 0x24d   :  { %510 = vmatpush.msrb.mxu0 %v880_v21 }
 0x24e   :  { %491 = vmatpush.msra.mxu3 %v889_v22 }
 0x24f   :  { %511 = vmatpush.msrb.mxu0 %v894_v23 }
 0x250   :  { %492 = vmatpush.msra.mxu3 %v899_v24 }
 0x251   :  { %512 = vmatpush.msrb.mxu0 %v908_v25 }
 0x252   :  { %493 = vmatpush.msra.mxu3 %v917_v26 }
 0x253   :  { %513 = vmatpush.msrb.mxu0 %v922_v27 }
 0x254   :  { %494 = vmatpush.msra.mxu3 %v931_v28 }
 0x255   :  { %514 = vmatpush.msrb.mxu0 %v936_v29 }
 0x256   :  { %495 = vmatpush.msra.mxu3 %v945_v30 }
 0x257   :  { %515 = vmatpush.msrb.mxu0 %v950_v31 }
 0x258   :  { %496 = vmatpush.msra.mxu3 %v955_v32 }
 0x259   :  { %516 = vmatpush.msrb.mxu0 %v964_v33 }
 0x25a   :  { %497 = vmatpush.msra.mxu3 %v969_v34 }
 0x25b   :  { %517 = vmatpush.msrb.mxu0 %v974_v35 }
 0x25c   :  { %498 = vmatpush.msra.mxu3 %v983_v36 }
 0x25d   :  { %518 = vmatpush.msrb.mxu0 %v988_v37 }
 0x2bb   :  { %v232_v44 = vpop.f32.mrf.mxu0 }
 0x2bc   :  { %v237_v48 = vperm.slane %v232_v44, 0 }
 0x2c0   :  { %v212_v45 = vpop.f32.mrf.mxu3 }
 0x2c1   :  { %v235_v46 = vperm.slane %v212_v45, 0 }
 0x2c3   :  { %v236_v49 = vadd.f32 %v235_v46, %v1120_v47 }
 0x2c5   :  { %v238_v50 = vadd.f32 %v237_v48, %v236_v49 }
 0x2c7   :  { %239 = vmax.xlane.f32.xlu1 %v238_v50 }
 0x33a   :  { %v240_v51 = vpop.xlane.xlu1 %239 }
 0x33b   :  { %v241_v52 = vsub.f32 %v238_v50, %v240_v51 }
 0x33d   :  { %v242_v53 = vmul.f32 1.442695, %v241_v52 }
 0x33f   :  { %673 = vpow2.f32 %v242_v53 }
 0x345   :  { %v674_v54 = vpop.eup %673 }
 0x346   :  { %244 = vadd.xlane.f32.xlu1 %v674_v54 }
 0x3b9   :  { %v245_v55 = vpop.xlane.xlu1 %244 }
 0x3ba   :  { %675 = vlog2.f32 %v245_v55 }
 0x3c0   :  { %v676_v56 = vpop.eup %675 }
 0x3c1   :  { %v247_v57 = vmul.f32 0.6931472, %v676_v56 }
 0x3c3   :  { %v248_v58 = vadd.f32 %v247_v57, %v240_v51 }
 0x3c5   :  { %v249_v59 = vmul.f32 %v1123_v63, %v248_v58 }
 0x3c7   :  { %v250_v60 = vrot.slane %v249_v59, 4 }
 0x3c9   :  { %v251_v61 = vadd.f32 %v250_v60, %v249_v59 }
 0x3cb   :  { %v252_v62 = vrot.slane %v251_v61, 2 }
 0x3cd   :  { %v253_v0 = vadd.f32 %v252_v62, %v251_v61 }
 0x3cf   :  { %v254_v1 = vrot.slane %v253_v0, 1 }
 0x3d1   :  { %v255_v2 = vadd.f32 %v254_v1, %v253_v0 }
 0x3d3   :  { %v256_v9 = vadd.f32 %v255_v2, %v190_v7 }
 0x3d5   :  { %257 = vst [vmem:[%s189_s6] sm:$0x1] %v256_v9  ;;  %s549_s6 = scalar_lea.vmem %s1266_s7, %s663_s2 }
 0x3dc   :  { %v264_v17 = vld [vmem:[%s263_s30] sm:$0x1] }
 0x3dd   :  { %v266_v38 = vld [vmem:[%s265_s10] sm:$0x1]  ;;  %283 = vmatmul.f32.vlgmr.msrb.gmra.mxu1 %v264_v17  ;;  %s662_s10 = sld [smem:[#allocation3 + $0x11]] }
 0x3de   :  { %303 = vmatmul.f32.vlgmr.msrb.gmra.mxu2 %v266_v38  ;;  %555 = vmatpush.msrb.mxu1 %v768_v3 }
 0x3df   :  { %575 = vmatpush.msrb.mxu2 %v773_v4 }
 0x3e0   :  { %556 = vmatpush.msrb.mxu1 %v778_v5 }
 0x3e1   :  { %576 = vmatpush.msrb.mxu2 %v784_v6 }
 0x3e2   :  { %557 = vmatpush.msrb.mxu1 %v793_v8 }
 0x3e3   :  { %577 = vmatpush.msrb.mxu2 %v803_v10  ;;  %s481_s15 = scalar_lea.vmem %s1266_s7, %s662_s10 }
 0x3e4   :  { %558 = vmatpush.msrb.mxu1 %v809_v11 }
 0x3e5   :  { %578 = vmatpush.msrb.mxu2 %v816_v12 }
 0x3e6   :  { %559 = vmatpush.msrb.mxu1 %v823_v13 }
 0x3e7   :  { %579 = vmatpush.msrb.mxu2 %v829_v14 }
 0x3e8   :  { %560 = vmatpush.msrb.mxu1 %v836_v15 }
 0x3e9   :  { %580 = vmatpush.msrb.mxu2 %v843_v16 }
 0x3ea   :  { %561 = vmatpush.msrb.mxu1 %v863_v18 }
 0x3eb   :  { %581 = vmatpush.msrb.mxu2 %v868_v19 }
 0x3ec   :  { %562 = vmatpush.msrb.mxu1 %v875_v20 }
 0x3ed   :  { %582 = vmatpush.msrb.mxu2 %v880_v21 }
 0x3ee   :  { %563 = vmatpush.msrb.mxu1 %v889_v22 }
 0x3ef   :  { %583 = vmatpush.msrb.mxu2 %v894_v23 }
 0x3f0   :  { %564 = vmatpush.msrb.mxu1 %v899_v24 }
 0x3f1   :  { %584 = vmatpush.msrb.mxu2 %v908_v25 }
 0x3f2   :  { %565 = vmatpush.msrb.mxu1 %v917_v26 }
 0x3f3   :  { %585 = vmatpush.msrb.mxu2 %v922_v27  ;;  %v262_v27 = vld [vmem:[%s261_s13] sm:$0x1] }
 0x3f4   :  { %566 = vmatpush.msrb.mxu1 %v931_v28 }
 0x3f5   :  { %586 = vmatpush.msrb.mxu2 %v936_v29 }
 0x3f6   :  { %567 = vmatpush.msrb.mxu1 %v945_v30 }
 0x3f7   :  { %587 = vmatpush.msrb.mxu2 %v950_v31 }
 0x3f8   :  { %568 = vmatpush.msrb.mxu1 %v955_v32 }
 0x3f9   :  { %588 = vmatpush.msrb.mxu2 %v964_v33 }
 0x3fa   :  { %569 = vmatpush.msrb.mxu1 %v969_v34 }
 0x3fb   :  { %589 = vmatpush.msrb.mxu2 %v974_v35 }
 0x3fc   :  { %570 = vmatpush.msrb.mxu1 %v983_v36 }
 0x3fd   :  { %590 = vmatpush.msrb.mxu2 %v988_v37 }
 0x45a   :  { %v284_v3 = vpop.f32.mrf.mxu1 }
 0x45b   :  { %v307_v4 = vperm.slane %v284_v3, 0 }
 0x45d   :  { %v308_v6 = vadd.f32 %v307_v4, %v1120_v47 }
 0x461   :  { %v304_v5 = vpop.f32.mrf.mxu2 }
 0x462   :  { %v309_v8 = vperm.slane %v304_v5, 0 }
 0x464   :  { %v310_v10 = vadd.f32 %v309_v8, %v308_v6 }
 0x466   :  { %311 = vmax.xlane.f32.xlu2 %v310_v10 }
 0x4d9   :  { %v312_v11 = vpop.xlane.xlu2 %311 }
 0x4da   :  { %v313_v12 = vsub.f32 %v310_v10, %v312_v11 }
 0x4dc   :  { %v314_v13 = vmul.f32 1.442695, %v313_v12 }
 0x4de   :  { %677 = vpow2.f32 %v314_v13 }
 0x4e4   :  { %v678_v14 = vpop.eup %677 }
 0x4e5   :  { %316 = vadd.xlane.f32.xlu2 %v678_v14 }
 0x558   :  { %v317_v15 = vpop.xlane.xlu2 %316 }
 0x559   :  { %679 = vlog2.f32 %v317_v15 }
 0x55f   :  { %v680_v16 = vpop.eup %679 }
 0x560   :  { %v319_v18 = vmul.f32 0.6931472, %v680_v16 }
 0x562   :  { %v320_v19 = vadd.f32 %v319_v18, %v312_v11 }
 0x564   :  { %v321_v20 = vmul.f32 %v1123_v63, %v320_v19 }
 0x566   :  { %v322_v21 = vrot.slane %v321_v20, 4 }
 0x568   :  { %v323_v22 = vadd.f32 %v322_v21, %v321_v20 }
 0x56a   :  { %v324_v23 = vrot.slane %v323_v22, 2 }
 0x56c   :  { %v325_v24 = vadd.f32 %v324_v23, %v323_v22 }
 0x56e   :  { %v326_v25 = vrot.slane %v325_v24, 1 }
 0x570   :  { %v327_v26 = vadd.f32 %v326_v25, %v325_v24 }
 0x572   :  { %v328_v28 = vadd.f32 %v327_v26, %v262_v27 }
 0x574   :  { %329 = vst [vmem:[%s261_s13] sm:$0x1] %v328_v28 }
 0x57b   :  { %v336_v29 = vld [vmem:[%s335_s16] sm:$0x1] }
 0x57c   :  { %v338_v30 = vld [vmem:[%s337_s19] sm:$0x1]  ;;  %355 = vmatmul.f32.vlgmr.msrb.gmra.mxu3 %v336_v29  ;;  %s665_s19 = sld [smem:[#allocation3 + $0x14]] }
 0x57d   :  { %375 = vmatmul.f32.vlgmr.msra.gmra.mxu0 %v338_v30  ;;  %v334_v54 = vld [vmem:[%s333_s23] sm:$0x1] }
 0x582   :  { %s553_s25 = scalar_lea.vmem %s1266_s7, %s665_s19 }
 0x5fa   :  { %v376_v31 = vpop.f32.mrf.mxu0 }
 0x5fb   :  { %v381_v34 = vperm.slane %v376_v31, 0 }
 0x5ff   :  { %v356_v32 = vpop.f32.mrf.mxu3 }
 0x600   :  { %v379_v33 = vperm.slane %v356_v32, 0 }
 0x602   :  { %v380_v35 = vadd.f32 %v379_v33, %v1120_v47 }
 0x604   :  { %v382_v36 = vadd.f32 %v381_v34, %v380_v35 }
 0x606   :  { %383 = vmax.xlane.f32.xlu0 %v382_v36 }
 0x679   :  { %v384_v37 = vpop.xlane.xlu0 %383 }
 0x67a   :  { %v385_v39 = vsub.f32 %v382_v36, %v384_v37 }
 0x67c   :  { %v386_v40 = vmul.f32 1.442695, %v385_v39 }
 0x67e   :  { %681 = vpow2.f32 %v386_v40 }
 0x684   :  { %v682_v41 = vpop.eup %681 }
 0x685   :  { %388 = vadd.xlane.f32.xlu1 %v682_v41 }
 0x6f8   :  { %v389_v42 = vpop.xlane.xlu1 %388 }
 0x6f9   :  { %683 = vlog2.f32 %v389_v42 }
 0x6ff   :  { %v684_v43 = vpop.eup %683 }
 0x700   :  { %v391_v44 = vmul.f32 0.6931472, %v684_v43 }
 0x702   :  { %v392_v45 = vadd.f32 %v391_v44, %v384_v37 }
 0x704   :  { %v393_v46 = vmul.f32 %v1123_v63, %v392_v45 }
 0x706   :  { %v394_v48 = vrot.slane %v393_v46, 4 }
 0x708   :  { %v395_v49 = vadd.f32 %v394_v48, %v393_v46 }
 0x70a   :  { %v396_v50 = vrot.slane %v395_v49, 2 }
 0x70c   :  { %v397_v51 = vadd.f32 %v396_v50, %v395_v49 }
 0x70e   :  { %v398_v52 = vrot.slane %v397_v51, 1 }
 0x710   :  { %v399_v53 = vadd.f32 %v398_v52, %v397_v51 }
 0x712   :  { %v400_v55 = vadd.f32 %v399_v53, %v334_v54 }
 0x714   :  { %401 = vst [vmem:[%s333_s23] sm:$0x1] %v400_v55 }
 0x71b   :  { %v408_v56 = vld [vmem:[%s407_s5] sm:$0x1] }
 0x71c   :  { %v410_v57 = vld [vmem:[%s409_s27] sm:$0x1]  ;;  %427 = vmatmul.f32.vlgmr.msra.gmra.mxu1 %v408_v56 }
 0x71d   :  { %447 = vmatmul.f32.vlgmr.msra.gmra.mxu2 %v410_v57  ;;  %v406_v14 = vld [vmem:[%s405_s8] sm:$0x1] }
 0x799   :  { %v428_v58 = vpop.f32.mrf.mxu1 }
 0x79a   :  { %v451_v59 = vperm.slane %v428_v58, 0 }
 0x79c   :  { %v452_v61 = vadd.f32 %v451_v59, %v1120_v47 }
 0x7a0   :  { %v448_v60 = vpop.f32.mrf.mxu2 }
 0x7a1   :  { %v453_v62 = vperm.slane %v448_v60, 0 }
 0x7a3   :  { %v454_v0 = vadd.f32 %v453_v62, %v452_v61 }
 0x7a5   :  { %455 = vmax.xlane.f32.xlu2 %v454_v0 }
 0x818   :  { %v456_v1 = vpop.xlane.xlu2 %455 }
 0x819   :  { %v457_v2 = vsub.f32 %v454_v0, %v456_v1 }
 0x81b   :  { %v458_v7 = vmul.f32 1.442695, %v457_v2 }
 0x81d   :  { %685 = vpow2.f32 %v458_v7 }
 0x823   :  { %v686_v9 = vpop.eup %685 }
 0x824   :  { %460 = vadd.xlane.f32.xlu0 %v686_v9 }
 0x897   :  { %v461_v17 = vpop.xlane.xlu0 %460 }
 0x898   :  { %687 = vlog2.f32 %v461_v17 }
 0x89e   :  { %v688_v38 = vpop.eup %687 }
 0x89f   :  { %v463_v3 = vmul.f32 0.6931472, %v688_v38 }
 0x8a1   :  { %v464_v4 = vadd.f32 %v463_v3, %v456_v1 }
 0x8a3   :  { %v465_v5 = vmul.f32 %v1123_v63, %v464_v4 }
 0x8a5   :  { %v466_v6 = vrot.slane %v465_v5, 4 }
 0x8a7   :  { %v467_v8 = vadd.f32 %v466_v6, %v465_v5 }
 0x8a9   :  { %v468_v10 = vrot.slane %v467_v8, 2 }
 0x8ab   :  { %v469_v11 = vadd.f32 %v468_v10, %v467_v8 }
 0x8ad   :  { %v470_v12 = vrot.slane %v469_v11, 1 }
 0x8af   :  { %v471_v13 = vadd.f32 %v470_v12, %v469_v11 }
 0x8b1   :  { %v472_v15 = vadd.f32 %v471_v13, %v406_v14 }
 0x8b3   :  { %473 = vst [vmem:[%s405_s8] sm:$0x1] %v472_v15 }
 0x8ba   :  { %v480_v16 = vld [vmem:[%s479_s12] sm:$0x1] }
 0x8bb   :  { %v482_v18 = vld [vmem:[%s481_s15] sm:$0x1]  ;;  %499 = vmatmul.f32.vlgmr.msra.gmra.mxu3 %v480_v16 }
 0x8bc   :  { %519 = vmatmul.f32.vlgmr.msrb.gmra.mxu0 %v482_v18  ;;  %v478_v41 = vld [vmem:[%s477_s17] sm:$0x1] }
 0x939   :  { %v520_v19 = vpop.f32.mrf.mxu0 }
 0x93a   :  { %v525_v22 = vperm.slane %v520_v19, 0 }
 0x93e   :  { %v500_v20 = vpop.f32.mrf.mxu3 }
 0x93f   :  { %v523_v21 = vperm.slane %v500_v20, 0 }
 0x941   :  { %v524_v23 = vadd.f32 %v523_v21, %v1120_v47 }
 0x943   :  { %v526_v24 = vadd.f32 %v525_v22, %v524_v23 }
 0x945   :  { %527 = vmax.xlane.f32.xlu1 %v526_v24 }
 0x9b8   :  { %v528_v25 = vpop.xlane.xlu1 %527 }
 0x9b9   :  { %v529_v26 = vsub.f32 %v526_v24, %v528_v25 }
 0x9bb   :  { %v530_v27 = vmul.f32 1.442695, %v529_v26 }
 0x9bd   :  { %689 = vpow2.f32 %v530_v27 }
 0x9c3   :  { %v690_v28 = vpop.eup %689 }
 0x9c4   :  { %532 = vadd.xlane.f32.xlu2 %v690_v28 }
 0xa37   :  { %v533_v29 = vpop.xlane.xlu2 %532 }
 0xa38   :  { %691 = vlog2.f32 %v533_v29 }
 0xa3e   :  { %v692_v30 = vpop.eup %691 }
 0xa3f   :  { %v535_v31 = vmul.f32 0.6931472, %v692_v30 }
 0xa41   :  { %v536_v32 = vadd.f32 %v535_v31, %v528_v25 }
 0xa43   :  { %v537_v33 = vmul.f32 %v1123_v63, %v536_v32 }
 0xa45   :  { %v538_v34 = vrot.slane %v537_v33, 4 }
 0xa47   :  { %v539_v35 = vadd.f32 %v538_v34, %v537_v33 }
 0xa49   :  { %v540_v36 = vrot.slane %v539_v35, 2 }
 0xa4b   :  { %v541_v37 = vadd.f32 %v540_v36, %v539_v35 }
 0xa4d   :  { %v542_v39 = vrot.slane %v541_v37, 1 }
 0xa4f   :  { %v543_v40 = vadd.f32 %v542_v39, %v541_v37 }
 0xa51   :  { %v544_v42 = vadd.f32 %v543_v40, %v478_v41 }
 0xa53   :  { %545 = vst [vmem:[%s477_s17] sm:$0x1] %v544_v42 }
 0xa5a   :  { %v552_v43 = vld [vmem:[%s551_s22] sm:$0x1] }
 0xa5b   :  { %v554_v44 = vld [vmem:[%s553_s25] sm:$0x1]  ;;  %571 = vmatmul.f32.vlgmr.msrb.gmra.mxu1 %v552_v43 }
 0xa5c   :  { %591 = vmatmul.f32.vlgmr.msrb.gmra.mxu2 %v554_v44  ;;  %v550_v7 = vld [vmem:[%s549_s6] sm:$0x1] }
 0xad8   :  { %v572_v45 = vpop.f32.mrf.mxu1 }
 0xad9   :  { %v595_v46 = vperm.slane %v572_v45, 0 }
 0xadb   :  { %v596_v49 = vadd.f32 %v595_v46, %v1120_v47 }
 0xadf   :  { %v592_v48 = vpop.f32.mrf.mxu2 }
 0xae0   :  { %v597_v50 = vperm.slane %v592_v48, 0 }
 0xae2   :  { %v598_v51 = vadd.f32 %v597_v50, %v596_v49 }
 0xae4   :  { %599 = vmax.xlane.f32.xlu0 %v598_v51 }
 0xb57   :  { %v600_v52 = vpop.xlane.xlu0 %599 }
 0xb58   :  { %v601_v53 = vsub.f32 %v598_v51, %v600_v52 }
 0xb5a   :  { %v602_v54 = vmul.f32 1.442695, %v601_v53 }
 0xb5c   :  { %693 = vpow2.f32 %v602_v54 }
 0xb62   :  { %v694_v55 = vpop.eup %693 }
 0xb63   :  { %604 = vadd.xlane.f32.xlu1 %v694_v55 }
 0xbd6   :  { %v605_v56 = vpop.xlane.xlu1 %604 }
 0xbd7   :  { %695 = vlog2.f32 %v605_v56 }
 0xbdd   :  { %v696_v57 = vpop.eup %695 }
 0xbde   :  { %v607_v58 = vmul.f32 0.6931472, %v696_v57 }
 0xbe0   :  { %v608_v59 = vadd.f32 %v607_v58, %v600_v52 }
 0xbe2   :  { %v609_v60 = vmul.f32 %v1123_v63, %v608_v59 }
 0xbe4   :  { %v610_v61 = vrot.slane %v609_v60, 4 }
 0xbe6   :  { %v611_v62 = vadd.f32 %v610_v61, %v609_v60 }
 0xbe8   :  { %v612_v47 = vrot.slane %v611_v62, 2 }
 0xbea   :  { %v613_v0 = vadd.f32 %v612_v47, %v611_v62 }
 0xbec   :  { %v614_v1 = vrot.slane %v613_v0, 1 }
 0xbee   :  { %v615_v2 = vadd.f32 %v614_v1, %v613_v0 }
 0xbf0   :  { %v616_v9 = vadd.f32 %v615_v2, %v550_v7 }
 0xbf2   :  { %617 = vst [vmem:[%s549_s6] sm:$0x1] %v616_v9 }

</bundles_post_ra>
